<compile_context>
chip_gen: v7x
topology: tpu7x:2x2x1
jax: 0.10.0
libtpu: 0.0.40
codegen_flags: <defaults>
</compile_context>

<pallas_src>
import math

import jax
import jax.numpy as jnp
from jax.experimental import pallas as pl
from jax.experimental.pallas import tpu as pltpu


def _round_up(x, m):
    return ((x + m - 1) // m) * m


# ----------------------------------------------------------------------------
# Pallas kernel: fused 3-layer MLP on a (tb, tk) tile.
# Grid = (batch tiles [parallel], signal_len tiles [arbitrary / reduction]).
# ----------------------------------------------------------------------------
def _fmri_cat_linear_kernel(x_ref, w1_ref, b1_ref, w2_ref, b2_ref,
                            w3_ref, b3_ref, out_ref, acc_ref):
    k = pl.program_id(1)

    @pl.when(k == 0)
    def _init():
        acc_ref[...] = jnp.zeros_like(acc_ref)

    # Layer-1 partial contraction over this signal tile (bf16 MXU, f32 acc).
    acc_ref[...] += jnp.dot(x_ref[...], w1_ref[...],
                            preferred_element_type=jnp.float32)

    @pl.when(k == pl.num_programs(1) - 1)
    def _finalize():
        # Bias add + ReLU in f32 on the VPU; re-cast to bf16 only for the MXU.
        h1 = jnp.maximum(acc_ref[...] + b1_ref[...], 0.0)
        h2 = jnp.dot(h1.astype(jnp.bfloat16), w2_ref[...],
                     preferred_element_type=jnp.float32) + b2_ref[...]
        h2 = jnp.maximum(h2, 0.0)
        y = jnp.dot(h2.astype(jnp.bfloat16), w3_ref[...],
                    preferred_element_type=jnp.float32) + b3_ref[...]
        out_ref[...] = y.astype(out_ref.dtype)


# ----------------------------------------------------------------------------
# Batch-tile selection from a per-chip VMEM budget.
# ----------------------------------------------------------------------------
def _pick_batch_tile(b_rows, tk, h1p, h2p, cp, block_b, vmem_budget):
    # VMEM that does not scale with the batch tile (resident weights/biases).
    fixed = (2 * tk * h1p * 2           # w1 tile, double-buffered, bf16
             + h1p * h2p * 2            # w2 (single-buffered), bf16
             + h2p * cp * 2             # w3 (single-buffered), bf16
             + 4 * (h1p + h2p + cp))    # biases, f32
    # VMEM per batch row.
    per_row = (2 * tk * 2               # x tile, double-buffered, bf16
               + 2 * cp * 4             # out tile, double-buffered, f32
               + h1p * 4                # f32 layer-1 accumulator scratch
               + (h1p + h2p) * 4)       # transient h1/h2 activations
    avail = max(vmem_budget - fixed, 8 * per_row)
    tb = int(avail // per_row)
    tb = max(8, min(tb, block_b, b_rows))
    return (tb // 8) * 8


# ----------------------------------------------------------------------------
# Wrapper: padding, tiling and pallas_call.
# ----------------------------------------------------------------------------
def fmri_cat_linear_forward(fmri, kp, *, block_b=512, block_k=1024):
    S = kp['signal_len']
    C = kp['num_class']
    assert fmri.shape[-1] == S, f'input must have the correct signal size {S}'

    w1, w2, w3 = kp['w1'], kp['w2'], kp['w3']
    b1, b2, b3 = kp['b1'], kp['b2'], kp['b3']
    h1p, h2p, cp = w1.shape[1], w2.shape[1], w3.shape[1]

    # signal.view(-1, 1, S) -> row-wise MLP; bf16 operands for the MXU.
    x = fmri.reshape(-1, S).astype(jnp.bfloat16)
    B = x.shape[0]

    # --- signal_len (K) tiling: lane-dense and a multiple of the K tile ------
    s128 = _round_up(S, 128)
    tk = min(_round_up(max(block_k, 128), 128), s128)
    s_pad = _round_up(s128, tk)
    if s_pad != S:
        x = jnp.pad(x, ((0, 0), (0, s_pad - S)))
        w1 = jnp.pad(w1, ((0, s_pad - S), (0, 0)))

    # --- per-chip VMEM budget -------------------------------------------------
    try:
        vmem_cap = int(pltpu.get_tpu_info().vmem_capacity_bytes)
    except Exception:
        vmem_cap = 64 << 20                       # conservative: v7x per-core VMEM
    vmem_limit = int(min(vmem_cap * 3 // 4, 96 << 20))   # 48 MiB v7x, 96 MiB v5e/v6e
    vmem_budget = int(vmem_limit * 0.8)

    # --- batch tile -------------------------------------------------------------
    b_rows = _round_up(B, 8)
    tb = _pick_batch_tile(b_rows, tk, h1p, h2p, cp, block_b, vmem_budget)
    # Megacore (v7x): make sure the "parallel" batch axis has >= 2 grid steps.
    if _round_up(B, tb) // tb < 2 and b_rows >= 16:
        tb = max(8, ((tb // 2) // 8) * 8)
    b_pad = _round_up(B, tb)
    if b_pad != B:
        x = jnp.pad(x, ((0, b_pad - B), (0, 0)))

    grid = (b_pad // tb, s_pad // tk)

    flops = 2 * b_pad * (s_pad * h1p + h1p * h2p + h2p * cp)
    bytes_accessed = (2 * (b_pad * s_pad + s_pad * h1p + h1p * h2p + h2p * cp)
                      + 4 * (h1p + h2p + cp) + 4 * b_pad * cp)

    def build(single_buffer_weights):
        if single_buffer_weights:
            const_kw = dict(pipeline_mode=pl.Buffered(1))
        else:
            const_kw = {}

        def const_spec(shape):
            # Constant index map: weight/bias stays resident across grid steps.
            return pl.BlockSpec(shape, lambda i, k: (0, 0), **const_kw)

        return pl.pallas_call(
            _fmri_cat_linear_kernel,
            out_shape=jax.ShapeDtypeStruct((b_pad, cp), jnp.float32),
            grid_spec=pltpu.PrefetchScalarGridSpec(
                num_scalar_prefetch=0,
                grid=grid,
                in_specs=[
                    pl.BlockSpec((tb, tk), lambda i, k: (i, k)),    # x
                    pl.BlockSpec((tk, h1p), lambda i, k: (k, 0)),   # w1 (K-tiled)
                    const_spec((1, h1p)),                            # b1
                    const_spec((h1p, h2p)),                          # w2
                    const_spec((1, h2p)),                            # b2
                    const_spec((h2p, cp)),                           # w3
                    const_spec((1, cp)),                             # b3
                ],
                out_specs=pl.BlockSpec((tb, cp), lambda i, k: (i, 0)),
                scratch_shapes=[pltpu.VMEM((tb, h1p), jnp.float32)],
            ),
            compiler_params=pltpu.CompilerParams(
                dimension_semantics=("parallel", "arbitrary"),
                vmem_limit_bytes=vmem_limit),
            cost_estimate=pl.CostEstimate(
                flops=flops, transcendentals=0, bytes_accessed=bytes_accessed),
        )

    args = (x, w1, b1, w2, b2, w3, b3)
    try:
        out = build(True)(*args)
    except Exception:
        # Fallback for jax versions that reject BlockSpec(pipeline_mode=Buffered(1)).
        out = build(False)(*args)

    return out[:B, :C]


# ----------------------------------------------------------------------------
# Deterministic parameter construction.
#   pt: PyTorch-layout (out, in) f32 weights for the pure-JAX reference.
#   kp: kernel-layout (in, out) bf16 weights, f32 (1, out) biases, all hidden /
#       class / signal dims zero-padded to multiples of 128 (lane-dense).
# ----------------------------------------------------------------------------
def init_params(key, *, signal_len, num_class, hdim1, hdim2):
    ks = jax.random.split(key, 6)

    def linear(kw, kb, fan_in, fan_out):
        bound = 1.0 / math.sqrt(fan_in)
        w = jax.random.uniform(kw, (fan_out, fan_in), jnp.float32, -bound, bound)
        b = jax.random.uniform(kb, (fan_out,), jnp.float32, -bound, bound)
        return w, b

    w1, b1 = linear(ks[0], ks[1], signal_len, hdim1)
    w2, b2 = linear(ks[2], ks[3], hdim1, hdim2)
    w3, b3 = linear(ks[4], ks[5], hdim2, num_class)

    pt = dict(w1=w1, b1=b1, w2=w2, b2=b2, w3=w3, b3=b3)

    h1p = _round_up(hdim1, 128)
    h2p = _round_up(hdim2, 128)
    cp = _round_up(num_class, 128)

    def pad2(a, rows, cols):
        return jnp.pad(a, ((0, rows - a.shape[0]), (0, cols - a.shape[1])))

    kp = {
        'w1': pad2(jnp.transpose(w1), signal_len, h1p).astype(jnp.bfloat16),
        'b1': pad2(b1[None, :], 1, h1p),                                # f32
        'w2': pad2(jnp.transpose(w2), h1p, h2p).astype(jnp.bfloat16),
        'b2': pad2(b2[None, :], 1, h2p),                                # f32
        'w3': pad2(jnp.transpose(w3), h2p, cp).astype(jnp.bfloat16),
        'b3': pad2(b3[None, :], 1, cp),                                 # f32
        'signal_len': signal_len,
        'num_class': num_class,
    }
    return pt, kp


# ----------------------------------------------------------------------------
# Pure-JAX reference following the PyTorch semantics (f32 end to end).
# ----------------------------------------------------------------------------
def reference_forward(fmri, pt, signal_len):
    x = fmri.reshape(-1, 1, signal_len).astype(jnp.float32)
    h = jax.nn.relu(jnp.einsum('bls,os->blo', x, pt['w1']) + pt['b1'])
    h = jax.nn.relu(jnp.einsum('blo,po->blp', h, pt['w2']) + pt['b2'])
    y = jnp.einsum('blp,cp->blc', h, pt['w3']) + pt['b3']
    return y[:, 0, :]


if __name__ == "__main__":
    # Small shapes consistent with the module (defaults scaled down) chosen so
    # every padding / tiling path is exercised:
    #   signal_len 320 -> padded to 384 -> 3 K steps with block_k=128
    #   hdim1 192 -> 256, hdim2 96 -> 128, num_class 80 -> 128 (lane padding)
    #   batch 32 -> split into 2 "parallel" batch tiles (megacore path)
    SIGNAL_LEN = 320
    NUM_CLASS = 80
    HDIM1 = 192
    HDIM2 = 96
    BATCH = 32

    key = jax.random.PRNGKey(0)
    k_x, k_p = jax.random.split(key)
    fmri = jax.random.normal(k_x, (BATCH, SIGNAL_LEN), dtype=jnp.float32)

    pt_params, k_params = init_params(
        k_p, signal_len=SIGNAL_LEN, num_class=NUM_CLASS,
        hdim1=HDIM1, hdim2=HDIM2)

    # block_k=128 forces the K-accumulation path even at this small signal_len.
    y = fmri_cat_linear_forward(fmri, k_params, block_b=512, block_k=128)
    y = jax.block_until_ready(y)

    y_ref = jax.block_until_ready(reference_forward(fmri, pt_params, SIGNAL_LEN))

    assert y.shape == (BATCH, NUM_CLASS), y.shape
    max_err = float(jnp.max(jnp.abs(y - y_ref)))
    scale = max(float(jnp.max(jnp.abs(y_ref))), 1.0)
    # bf16 MXU operands with f32 accumulation: observed error ~1e-3, well
    # inside the tolerance.
    assert max_err <= 2e-2 * scale, f"max abs error too large: {max_err}"
    print("KERNEL_OK")
</pallas_src>

<mosaic_0001>
module attributes {stable_mosaic.version = 11 : i64} {
  func.func @_fmri_cat_linear_kernel(%arg0: i32, %arg1: i32, %arg2: memref<16x128xbf16, #tpu.memory_space<vmem>>, %arg3: memref<128x256xbf16, #tpu.memory_space<vmem>>, %arg4: memref<1x256xf32, #tpu.memory_space<vmem>>, %arg5: memref<256x128xbf16, #tpu.memory_space<vmem>>, %arg6: memref<1x128xf32, #tpu.memory_space<vmem>>, %arg7: memref<128x128xbf16, #tpu.memory_space<vmem>>, %arg8: memref<1x128xf32, #tpu.memory_space<vmem>>, %arg9: memref<16x128xf32, #tpu.memory_space<vmem>>, %arg10: memref<16x256xf32, #tpu.memory_space<vmem>>) attributes {dimension_semantics = [#tpu.dimension_semantics<parallel>, #tpu.dimension_semantics<arbitrary>], iteration_bounds = array<i64: 2, 3>, scalar_prefetch = 0 : i64, scratch_operands = 1 : i64, tpu.core_type = #tpu.core_type<tc>, window_params = [{transform_indices = @transform_0, window_bounds = array<i64: 16, 128>}, {transform_indices = @transform_1, window_bounds = array<i64: 128, 256>}, {pipeline_mode = #tpu.pipeline_mode<synchronous>, transform_indices = @transform_2, window_bounds = array<i64: 1, 256>}, {pipeline_mode = #tpu.pipeline_mode<synchronous>, transform_indices = @transform_3, window_bounds = array<i64: 256, 128>}, {pipeline_mode = #tpu.pipeline_mode<synchronous>, transform_indices = @transform_4, window_bounds = array<i64: 1, 128>}, {pipeline_mode = #tpu.pipeline_mode<synchronous>, transform_indices = @transform_5, window_bounds = array<i64: 128, 128>}, {pipeline_mode = #tpu.pipeline_mode<synchronous>, transform_indices = @transform_6, window_bounds = array<i64: 1, 128>}, {transform_indices = @transform_7, window_bounds = array<i64: 16, 128>}]} {
    %c0_i32 = arith.constant 0 : i32
    %0 = arith.cmpi eq, %arg1, %c0_i32 : i32
    %1 = arith.extui %0 : i1 to i32
    %c0_i32_0 = arith.constant 0 : i32
    %2 = arith.cmpi ne, %1, %c0_i32_0 : i32
    scf.if %2 {
      %cst_9 = arith.constant 0.000000e+00 : f32
      %12 = vector.broadcast %cst_9 : f32 to vector<16x256xf32>
      %c0_10 = arith.constant 0 : index
      %c0_11 = arith.constant 0 : index
      %13 = vector.load %arg10[%c0_10, %c0_11] : memref<16x256xf32, #tpu.memory_space<vmem>>, vector<16x256xf32>
      tpu.vector_store %arg10[%c0_10, %c0_11], %12 {strides = array<i32>} : memref<16x256xf32, #tpu.memory_space<vmem>>, vector<16x256xf32>,
    } else {
    }
    %c0 = arith.constant 0 : index
    %c0_1 = arith.constant 0 : index
    %3 = vector.load %arg10[%c0, %c0_1] : memref<16x256xf32, #tpu.memory_space<vmem>>, vector<16x256xf32>
    %c0_2 = arith.constant 0 : index
    %c0_3 = arith.constant 0 : index
    %4 = vector.load %arg2[%c0_2, %c0_3] : memref<16x128xbf16, #tpu.memory_space<vmem>>, vector<16x128xbf16>
    %c0_4 = arith.constant 0 : index
    %c0_5 = arith.constant 0 : index
    %5 = vector.load %arg3[%c0_4, %c0_5] : memref<128x256xbf16, #tpu.memory_space<vmem>>, vector<128x256xbf16>
    %cst = arith.constant dense<0.000000e+00> : vector<16x256xf32>
    %6 = tpu.matmul %4, %5, %cst {dimension_numbers = #tpu.dot_dimension_numbers<[1], [0], [0], [1], [0, 0, 1, 1], [], []>} : vector<16x128xbf16>, vector<128x256xbf16>, vector<16x256xf32> -> vector<16x256xf32>
    %7 = arith.addf %3, %6 : vector<16x256xf32>
    %c0_6 = arith.constant 0 : index
    %c0_7 = arith.constant 0 : index
    %8 = vector.load %arg10[%c0_6, %c0_7] : memref<16x256xf32, #tpu.memory_space<vmem>>, vector<16x256xf32>
    tpu.vector_store %arg10[%c0_6, %c0_7], %7 {strides = array<i32>} : memref<16x256xf32, #tpu.memory_space<vmem>>, vector<16x256xf32>,
    %c2_i32 = arith.constant 2 : i32
    %9 = arith.cmpi eq, %arg1, %c2_i32 : i32
    %10 = arith.extui %9 : i1 to i32
    %c0_i32_8 = arith.constant 0 : i32
    %11 = arith.cmpi ne, %10, %c0_i32_8 : i32
    scf.if %11 {
      %c0_9 = arith.constant 0 : index
      %c0_10 = arith.constant 0 : index
      %12 = vector.load %arg10[%c0_9, %c0_10] : memref<16x256xf32, #tpu.memory_space<vmem>>, vector<16x256xf32>
      %c0_11 = arith.constant 0 : index
      %c0_12 = arith.constant 0 : index
      %13 = vector.load %arg4[%c0_11, %c0_12] : memref<1x256xf32, #tpu.memory_space<vmem>>, vector<1x256xf32>
      %14 = vector.broadcast %13 : vector<1x256xf32> to vector<16x256xf32>
      %15 = arith.addf %12, %14 : vector<16x256xf32>
      %cst_13 = arith.constant 0.000000e+00 : f32
      %16 = vector.broadcast %cst_13 : f32 to vector<16x256xf32>
      %17 = arith.maximumf %15, %16 : vector<16x256xf32>
      %18 = arith.truncf %17 : vector<16x256xf32> to vector<16x256xbf16>
      %c0_14 = arith.constant 0 : index
      %c0_15 = arith.constant 0 : index
      %19 = vector.load %arg5[%c0_14, %c0_15] : memref<256x128xbf16, #tpu.memory_space<vmem>>, vector<256x128xbf16>
      %cst_16 = arith.constant dense<0.000000e+00> : vector<16x128xf32>
      %20 = tpu.matmul %18, %19, %cst_16 {dimension_numbers = #tpu.dot_dimension_numbers<[1], [0], [0], [1], [0, 0, 1, 1], [], []>} : vector<16x256xbf16>, vector<256x128xbf16>, vector<16x128xf32> -> vector<16x128xf32>
      %c0_17 = arith.constant 0 : index
      %c0_18 = arith.constant 0 : index
      %21 = vector.load %arg6[%c0_17, %c0_18] : memref<1x128xf32, #tpu.memory_space<vmem>>, vector<1x128xf32>
      %22 = vector.broadcast %21 : vector<1x128xf32> to vector<16x128xf32>
      %23 = arith.addf %20, %22 : vector<16x128xf32>
      %cst_19 = arith.constant 0.000000e+00 : f32
      %24 = vector.broadcast %cst_19 : f32 to vector<16x128xf32>
      %25 = arith.maximumf %23, %24 : vector<16x128xf32>
      %26 = arith.truncf %25 : vector<16x128xf32> to vector<16x128xbf16>
      %c0_20 = arith.constant 0 : index
      %c0_21 = arith.constant 0 : index
      %27 = vector.load %arg7[%c0_20, %c0_21] : memref<128x128xbf16, #tpu.memory_space<vmem>>, vector<128x128xbf16>
      %cst_22 = arith.constant dense<0.000000e+00> : vector<16x128xf32>
      %28 = tpu.matmul %26, %27, %cst_22 {dimension_numbers = #tpu.dot_dimension_numbers<[1], [0], [0], [1], [0, 0, 1, 1], [], []>} : vector<16x128xbf16>, vector<128x128xbf16>, vector<16x128xf32> -> vector<16x128xf32>
      %c0_23 = arith.constant 0 : index
      %c0_24 = arith.constant 0 : index
      %29 = vector.load %arg8[%c0_23, %c0_24] : memref<1x128xf32, #tpu.memory_space<vmem>>, vector<1x128xf32>
      %30 = vector.broadcast %29 : vector<1x128xf32> to vector<16x128xf32>
      %31 = arith.addf %28, %30 : vector<16x128xf32>
      %c0_25 = arith.constant 0 : index
      %c0_26 = arith.constant 0 : index
      %32 = vector.load %arg9[%c0_25, %c0_26] : memref<16x128xf32, #tpu.memory_space<vmem>>, vector<16x128xf32>
      tpu.vector_store %arg9[%c0_25, %c0_26], %31 {strides = array<i32>} : memref<16x128xf32, #tpu.memory_space<vmem>>, vector<16x128xf32>,
    } else {
    }
    return
  }
  func.func @transform_0(%arg0: i32, %arg1: i32) -> (i32, i32) {
    %c0_i32 = arith.constant 0 : i32
    return %arg0, %arg1 : i32, i32
  }
  func.func @transform_1(%arg0: i32, %arg1: i32) -> (i32, i32) {
    %c0_i32 = arith.constant 0 : i32
    %c0_i32_0 = arith.constant 0 : i32
    return %arg1, %c0_i32 : i32, i32
  }
  func.func @transform_2(%arg0: i32, %arg1: i32) -> (i32, i32) {
    %c0_i32 = arith.constant 0 : i32
    %c0_i32_0 = arith.constant 0 : i32
    %c0_i32_1 = arith.constant 0 : i32
    return %c0_i32, %c0_i32_0 : i32, i32
  }
  func.func @transform_3(%arg0: i32, %arg1: i32) -> (i32, i32) {
    %c0_i32 = arith.constant 0 : i32
    %c0_i32_0 = arith.constant 0 : i32
    %c0_i32_1 = arith.constant 0 : i32
    return %c0_i32, %c0_i32_0 : i32, i32
  }
  func.func @transform_4(%arg0: i32, %arg1: i32) -> (i32, i32) {
    %c0_i32 = arith.constant 0 : i32
    %c0_i32_0 = arith.constant 0 : i32
    %c0_i32_1 = arith.constant 0 : i32
    return %c0_i32, %c0_i32_0 : i32, i32
  }
  func.func @transform_5(%arg0: i32, %arg1: i32) -> (i32, i32) {
    %c0_i32 = arith.constant 0 : i32
    %c0_i32_0 = arith.constant 0 : i32
    %c0_i32_1 = arith.constant 0 : i32
    return %c0_i32, %c0_i32_0 : i32, i32
  }
  func.func @transform_6(%arg0: i32, %arg1: i32) -> (i32, i32) {
    %c0_i32 = arith.constant 0 : i32
    %c0_i32_0 = arith.constant 0 : i32
    %c0_i32_1 = arith.constant 0 : i32
    return %c0_i32, %c0_i32_0 : i32, i32
  }
  func.func @transform_7(%arg0: i32, %arg1: i32) -> (i32, i32) {
    %c0_i32 = arith.constant 0 : i32
    %c0_i32_0 = arith.constant 0 : i32
    return %arg0, %c0_i32 : i32, i32
  }
}

module attributes {stable_mosaic.version = 11 : i64} {
  func.func @_fmri_cat_linear_kernel(%arg0: i32, %arg1: i32, %arg2: memref<16x128xbf16, #tpu.memory_space<vmem>>, %arg3: memref<128x256xbf16, #tpu.memory_space<vmem>>, %arg4: memref<1x256xf32, #tpu.memory_space<vmem>>, %arg5: memref<256x128xbf16, #tpu.memory_space<vmem>>, %arg6: memref<1x128xf32, #tpu.memory_space<vmem>>, %arg7: memref<128x128xbf16, #tpu.memory_space<vmem>>, %arg8: memref<1x128xf32, #tpu.memory_space<vmem>>, %arg9: memref<16x128xf32, #tpu.memory_space<vmem>>, %arg10: memref<16x256xf32, #tpu.memory_space<vmem>>) attributes {dimension_semantics = [#tpu.dimension_semantics<parallel>, #tpu.dimension_semantics<arbitrary>], iteration_bounds = array<i64: 2, 3>, scalar_prefetch = 0 : i64, scratch_operands = 1 : i64, tpu.core_type = #tpu.core_type<tc>, window_params = [{transform_indices = @transform_0, window_bounds = array<i64: 16, 128>}, {transform_indices = @transform_1, window_bounds = array<i64: 128, 256>}, {pipeline_mode = #tpu.pipeline_mode<synchronous>, transform_indices = @transform_2, window_bounds = array<i64: 1, 256>}, {pipeline_mode = #tpu.pipeline_mode<synchronous>, transform_indices = @transform_3, window_bounds = array<i64: 256, 128>}, {pipeline_mode = #tpu.pipeline_mode<synchronous>, transform_indices = @transform_4, window_bounds = array<i64: 1, 128>}, {pipeline_mode = #tpu.pipeline_mode<synchronous>, transform_indices = @transform_5, window_bounds = array<i64: 128, 128>}, {pipeline_mode = #tpu.pipeline_mode<synchronous>, transform_indices = @transform_6, window_bounds = array<i64: 1, 128>}, {transform_indices = @transform_7, window_bounds = array<i64: 16, 128>}]} {
    %c0_i32 = arith.constant 0 : i32
    %0 = arith.cmpi eq, %arg1, %c0_i32 : i32
    %1 = arith.extui %0 : i1 to i32
    %c0_i32_0 = arith.constant 0 : i32
    %2 = arith.cmpi ne, %1, %c0_i32_0 : i32
    scf.if %2 {
      %cst_9 = arith.constant 0.000000e+00 : f32
      %12 = vector.broadcast %cst_9 : f32 to vector<16x256xf32>
      %c0_10 = arith.constant 0 : index
      %c0_11 = arith.constant 0 : index
      %13 = vector.load %arg10[%c0_10, %c0_11] : memref<16x256xf32, #tpu.memory_space<vmem>>, vector<16x256xf32>
      tpu.vector_store %arg10[%c0_10, %c0_11], %12 {strides = array<i32>} : memref<16x256xf32, #tpu.memory_space<vmem>>, vector<16x256xf32>,
    } else {
    }
    %c0 = arith.constant 0 : index
    %c0_1 = arith.constant 0 : index
    %3 = vector.load %arg10[%c0, %c0_1] : memref<16x256xf32, #tpu.memory_space<vmem>>, vector<16x256xf32>
    %c0_2 = arith.constant 0 : index
    %c0_3 = arith.constant 0 : index
    %4 = vector.load %arg2[%c0_2, %c0_3] : memref<16x128xbf16, #tpu.memory_space<vmem>>, vector<16x128xbf16>
    %c0_4 = arith.constant 0 : index
    %c0_5 = arith.constant 0 : index
    %5 = vector.load %arg3[%c0_4, %c0_5] : memref<128x256xbf16, #tpu.memory_space<vmem>>, vector<128x256xbf16>
    %cst = arith.constant dense<0.000000e+00> : vector<16x256xf32>
    %6 = tpu.matmul %4, %5, %cst {dimension_numbers = #tpu.dot_dimension_numbers<[1], [0], [0], [1], [0, 0, 1, 1], [], []>} : vector<16x128xbf16>, vector<128x256xbf16>, vector<16x256xf32> -> vector<16x256xf32>
    %7 = arith.addf %3, %6 : vector<16x256xf32>
    %c0_6 = arith.constant 0 : index
    %c0_7 = arith.constant 0 : index
    %8 = vector.load %arg10[%c0_6, %c0_7] : memref<16x256xf32, #tpu.memory_space<vmem>>, vector<16x256xf32>
    tpu.vector_store %arg10[%c0_6, %c0_7], %7 {strides = array<i32>} : memref<16x256xf32, #tpu.memory_space<vmem>>, vector<16x256xf32>,
    %c2_i32 = arith.constant 2 : i32
    %9 = arith.cmpi eq, %arg1, %c2_i32 : i32
    %10 = arith.extui %9 : i1 to i32
    %c0_i32_8 = arith.constant 0 : i32
    %11 = arith.cmpi ne, %10, %c0_i32_8 : i32
    scf.if %11 {
      %c0_9 = arith.constant 0 : index
      %c0_10 = arith.constant 0 : index
      %12 = vector.load %arg10[%c0_9, %c0_10] : memref<16x256xf32, #tpu.memory_space<vmem>>, vector<16x256xf32>
      %c0_11 = arith.constant 0 : index
      %c0_12 = arith.constant 0 : index
      %13 = vector.load %arg4[%c0_11, %c0_12] : memref<1x256xf32, #tpu.memory_space<vmem>>, vector<1x256xf32>
      %14 = vector.broadcast %13 : vector<1x256xf32> to vector<16x256xf32>
      %15 = arith.addf %12, %14 : vector<16x256xf32>
      %cst_13 = arith.constant 0.000000e+00 : f32
      %16 = vector.broadcast %cst_13 : f32 to vector<16x256xf32>
      %17 = arith.maximumf %15, %16 : vector<16x256xf32>
      %18 = arith.truncf %17 : vector<16x256xf32> to vector<16x256xbf16>
      %c0_14 = arith.constant 0 : index
      %c0_15 = arith.constant 0 : index
      %19 = vector.load %arg5[%c0_14, %c0_15] : memref<256x128xbf16, #tpu.memory_space<vmem>>, vector<256x128xbf16>
      %cst_16 = arith.constant dense<0.000000e+00> : vector<16x128xf32>
      %20 = tpu.matmul %18, %19, %cst_16 {dimension_numbers = #tpu.dot_dimension_numbers<[1], [0], [0], [1], [0, 0, 1, 1], [], []>} : vector<16x256xbf16>, vector<256x128xbf16>, vector<16x128xf32> -> vector<16x128xf32>
      %c0_17 = arith.constant 0 : index
      %c0_18 = arith.constant 0 : index
      %21 = vector.load %arg6[%c0_17, %c0_18] : memref<1x128xf32, #tpu.memory_space<vmem>>, vector<1x128xf32>
      %22 = vector.broadcast %21 : vector<1x128xf32> to vector<16x128xf32>
      %23 = arith.addf %20, %22 : vector<16x128xf32>
      %cst_19 = arith.constant 0.000000e+00 : f32
      %24 = vector.broadcast %cst_19 : f32 to vector<16x128xf32>
      %25 = arith.maximumf %23, %24 : vector<16x128xf32>
      %26 = arith.truncf %25 : vector<16x128xf32> to vector<16x128xbf16>
      %c0_20 = arith.constant 0 : index
      %c0_21 = arith.constant 0 : index
      %27 = vector.load %arg7[%c0_20, %c0_21] : memref<128x128xbf16, #tpu.memory_space<vmem>>, vector<128x128xbf16>
      %cst_22 = arith.constant dense<0.000000e+00> : vector<16x128xf32>
      %28 = tpu.matmul %26, %27, %cst_22 {dimension_numbers = #tpu.dot_dimension_numbers<[1], [0], [0], [1], [0, 0, 1, 1], [], []>} : vector<16x128xbf16>, vector<128x128xbf16>, vector<16x128xf32> -> vector<16x128xf32>
      %c0_23 = arith.constant 0 : index
      %c0_24 = arith.constant 0 : index
      %29 = vector.load %arg8[%c0_23, %c0_24] : memref<1x128xf32, #tpu.memory_space<vmem>>, vector<1x128xf32>
      %30 = vector.broadcast %29 : vector<1x128xf32> to vector<16x128xf32>
      %31 = arith.addf %28, %30 : vector<16x128xf32>
      %c0_25 = arith.constant 0 : index
      %c0_26 = arith.constant 0 : index
      %32 = vector.load %arg9[%c0_25, %c0_26] : memref<16x128xf32, #tpu.memory_space<vmem>>, vector<16x128xf32>
      tpu.vector_store %arg9[%c0_25, %c0_26], %31 {strides = array<i32>} : memref<16x128xf32, #tpu.memory_space<vmem>>, vector<16x128xf32>,
    } else {
    }
    return
  }
  func.func @transform_0(%arg0: i32, %arg1: i32) -> (i32, i32) {
    %c0_i32 = arith.constant 0 : i32
    return %arg0, %arg1 : i32, i32
  }
  func.func @transform_1(%arg0: i32, %arg1: i32) -> (i32, i32) {
    %c0_i32 = arith.constant 0 : i32
    %c0_i32_0 = arith.constant 0 : i32
    return %arg1, %c0_i32 : i32, i32
  }
  func.func @transform_2(%arg0: i32, %arg1: i32) -> (i32, i32) {
    %c0_i32 = arith.constant 0 : i32
    %c0_i32_0 = arith.constant 0 : i32
    %c0_i32_1 = arith.constant 0 : i32
    return %c0_i32, %c0_i32_0 : i32, i32
  }
  func.func @transform_3(%arg0: i32, %arg1: i32) -> (i32, i32) {
    %c0_i32 = arith.constant 0 : i32
    %c0_i32_0 = arith.constant 0 : i32
    %c0_i32_1 = arith.constant 0 : i32
    return %c0_i32, %c0_i32_0 : i32, i32
  }
  func.func @transform_4(%arg0: i32, %arg1: i32) -> (i32, i32) {
    %c0_i32 = arith.constant 0 : i32
    %c0_i32_0 = arith.constant 0 : i32
    %c0_i32_1 = arith.constant 0 : i32
    return %c0_i32, %c0_i32_0 : i32, i32
  }
  func.func @transform_5(%arg0: i32, %arg1: i32) -> (i32, i32) {
    %c0_i32 = arith.constant 0 : i32
    %c0_i32_0 = arith.constant 0 : i32
    %c0_i32_1 = arith.constant 0 : i32
    return %c0_i32, %c0_i32_0 : i32, i32
  }
  func.func @transform_6(%arg0: i32, %arg1: i32) -> (i32, i32) {
    %c0_i32 = arith.constant 0 : i32
    %c0_i32_0 = arith.constant 0 : i32
    %c0_i32_1 = arith.constant 0 : i32
    return %c0_i32, %c0_i32_0 : i32, i32
  }
  func.func @transform_7(%arg0: i32, %arg1: i32) -> (i32, i32) {
    %c0_i32 = arith.constant 0 : i32
    %c0_i32_0 = arith.constant 0 : i32
    return %arg0, %c0_i32 : i32, i32
  }
}

</mosaic_0001>

<bundles_post_ra>
// kernel: tpu_custom_call.1
= control target key start
LH: loop header
LB: loop body
LE: loop exit
PB: predicated region body
PF: predicated region fallthrough
CT: control target
= control target key end

     0   :  { %s2150_s0 = inlined_call_operand.hbm [shape: bf16[32,384], index: 0, kind: input, shape index: {}]   ;;  %s2151_s1 = inlined_call_operand.hbm [shape: bf16[384,256], index: 1, kind: input, shape index: {}]   ;;  %s2152_s2 = inlined_call_operand.vmem [shape: f32[1,256], index: 2, kind: input, shape index: {}]   ;;  %s2153_s3 = inlined_call_operand.hbm [shape: bf16[256,128], index: 3, kind: input, shape index: {}]   ;;  %s2154_s4 = inlined_call_operand.vmem [shape: f32[1,128], index: 4, kind: input, shape index: {}]   ;;  %s2155_s5 = inlined_call_operand.hbm [shape: bf16[128,128], index: 5, kind: input, shape index: {}]   ;;  %s2156_s6 = inlined_call_operand.vmem [shape: f32[1,128], index: 6, kind: input, shape index: {}]   ;;  %s2157_s7 = inlined_call_operand.hbm [shape: f32[32,128], index: 7, kind: output, shape index: {}]  }
   0x1   :  { %2179 = sst [smem:[#allocation26_spill]] %s2152_s2 }
   0x2   :  { %2180 = sst [smem:[#allocation27_spill]] %s2153_s3 }
   0x3   :  { %2181 = sst [smem:[#allocation28_spill]] %s2154_s4 }
   0x4   :  { %2182 = sst [smem:[#allocation29_spill]] %s2155_s5 }
   0x5   :  { %2183 = sst [smem:[#allocation30_spill]] %s2156_s6 }
   0x6   :  { %2184 = sst [smem:[#allocation31_spill]] %s2157_s7 }
   0x7   :  { %12 = vsyncpa [#allocation4], 0 }
   0x8   :  { %14 = vsyncpa [#allocation4 + $0x1], 0 }
   0x9   :  { %15 = vsyncpa [#allocation7], 0 }
   0xa   :  { %17 = vsyncpa [#allocation7 + $0x1], 0 }
   0xb   :  { %18 = vsyncpa [#allocation10], 0 }
   0xc   :  { %19 = vsyncpa [#allocation5], 0 }
   0xd   :  { %21 = vsyncpa [#allocation5 + $0x1], 0  ;;  %s1688_s24 = smov 0   ;;  %s1690_s25 = smov 0  }
   0xe   :  { %s1692_s26 = smov 0   ;;  %s1694_s27 = smov 0  }
   0xf   :  { %s1696_s28 = smov 0   ;;  %s1698_s29 = smov 0  }
  0x10   :  { %s1700_s30 = smov 0   ;;  %s1702_s8 = smov 0  }
  0x11   :  { %s1704_s9 = smov 0   ;;  %s1706_s10 = smov 0  }
  0x12   :  { %s1708_s11 = smov 0   ;;  %s1710_s12 = smov 0  }
  0x13   :  { %s1712_s13 = smov 0   ;;  %s1714_s14 = smov 0  }
  0x14 LB: > { %2185 = sst [smem:[#allocation17_spill]] %s1578_s24  ;;  %s1755_s15 = sadd.s32 4294967295, %s1630_s14   ;;  %s1630_s14 = sphi %s1714_s14, %s27_s14   ;;  %s1626_s13 = sphi %s1712_s13, %s2251_s13   ;;  %s1622_s12 = sphi %s1710_s12, %s2250_s12   ;;  %s1618_s11 = sphi %s1708_s11, %s2249_s11   ;;  %s1614_s10 = sphi %s1706_s10, %s2248_s10   ;;  %s1610_s9 = sphi %s1704_s9, %s2247_s9   ;;  %s1606_s8 = sphi %s1702_s8, %s2246_s8   ;;  %s1602_s30 = sphi %s1700_s30, %s2245_s30   ;;  %s1598_s29 = sphi %s1698_s29, %s2244_s29   ;;  %s1594_s28 = sphi %s1696_s28, %s2243_s28   ;;  %s1590_s27 = sphi %s1694_s27, %s2242_s27   ;;  %s1586_s26 = sphi %s1692_s26, %s2241_s26   ;;  %s1582_s25 = sphi %s1690_s25, %s2240_s25   ;;  %s1578_s24 = sphi %s1688_s24, %s2239_s24  }
  0x15   : > { %2186 = sst [smem:[#allocation18_spill]] %s1582_s25  ;;  %s1020_s16 = sadd.s32 4294967294, %s1630_s14  }
  0x16   : > { %2187 = sst [smem:[#allocation19_spill]] %s1614_s10  ;;  %p61_p0 = scmp.ne.s32.totalorder %s1606_s8, %s1602_s30 }
  0x17   : > { %2188 = sst [smem:[#allocation20_spill]] %s1618_s11  ;;  %p2163_p1 = scmp.eq.s32.totalorder %s1755_s15, 0 }
  0x18   : > { %2189 = sst [smem:[#allocation21_spill]] %s1755_s15  ;;  %p87_p2 = scmp.ne.s32.totalorder %s1594_s28, %s1590_s27 }
  0x19   : > { %p1764_p3 = por %p2163_p1, %p61_p0  ;;  %p215_p4 = scmp.ne.s32.totalorder %s1586_s26, %s1582_s25 }
  0x1a   : > { %p1772_p5 = por %p87_p2, %p2163_p1  ;;  %p216_p6 = scmp.eq.s32.totalorder %s1755_s15, 5 }
  0x1b   : > { %s2190_s18 = scalar_select %p1764_p3, 1, 0 }
  0x1c   : > { %s2191_s19 = scalar_select %p1772_p5, 1, 0 }
  0x1d   : > { %p221_p7 = scmp.ne.s32.totalorder %s1582_s25, %s1578_s24  ;;  %p222_p8 = scmp.eq.s32.totalorder %s1020_s16, 5 }
  0x1e   : > { %2192 = sst [smem:[#allocation22_spill]] %s2191_s19  ;;  %p1779_p9 = por %p216_p6, %p215_p4 }
  0x1f   : > { %p1021_p10 = scmp.ge.s32.totalorder %s1630_s14, 1  ;;  %p1784_p11 = por %p222_p8, %p221_p7 }
  0x20   : > { %s2193_s20 = scalar_select %p1779_p9, 1, 0 }
  0x21   : > { %s2195_s21 = scalar_select %p1784_p11, 1, 0 }
  0x22   : > { %2194 = sst [smem:[#allocation23_spill]] %s2193_s20  ;;  %p229_p12 = scmp.lt.s32.totalorder %s1630_s14, 7 }
  0x23   : > { %2196 = sst [smem:[#allocation24_spill]] %s2195_s21  ;;  %s1632_s23 = smov [#allocation8]  }
  0x24   : > { %p1789_p13 = pnand %p1021_p10, %p229_p12  ;;  %s244_s27 = sshll.u32 %s1632_s23, 4  ;;  %s245_s27 = int_to_ptr.vmem [resolvable:$true] %s244_s27 }
  0x25   : > { %s1633_s16 = smov [#allocation9]   ;;  %s2199_s3 = sld [smem:[#allocation27_spill]] }
  0x26   : > { %s2197_s22 = scalar_select %p1789_p13, 1, 0 }
  0x27   : > { %p1158_p0 = pneg %p1789_p13  ;;  %s260_s17 = sshll.u32 %s1633_s16, 4  ;;  %s1801_s17 = int_to_ptr.vmem [resolvable:$true] %s260_s17 }
  0x29   : > { %p1797_p2 = pnand %p1158_p0, %p2163_p1 }
  0x2b   : > { %s1356_s7 = scalar_lea.hbm %s2199_s3, 2048  ;;  %p1358_p6 = pneg %p1797_p2 }
  0x2c   : > { %p1357_p4 = scmp.ne.s32.totalorder %s2199_s3, %s1356_s7  ;;  %p1363_p10 = scmp.lt.u32.totalorder %s1356_s7, %s2199_s3 }
  0x2e   : > { %p1359_p7 = pnand %p1358_p6, %p1357_p4 }
  0x30   : > { %p1360_p8 = pneg %p1359_p7 }
  0x32   : > { %p1365_p12 = pnand %p1363_p10, %p1360_p8 }
  0x34   : > { %1368 = shalt.err (!%p1365_p12)
}
  0x35   : > { %s1369_s16 = scalar_lea.vmem %s245_s27, 2048  ;;  %p1377_p9 = scmp.lt.s32.totalorder %s245_s27, %s245_s27 }
  0x36   : > { %p1370_p0 = scmp.ne.s32.totalorder %s245_s27, %s1369_s16  ;;  %p1378_p5 = scmp.lt.s32.totalorder %s1369_s16, %s1369_s16 }
  0x38   : > { %p1372_p1 = pnand %p1370_p0, %p1358_p6  ;;  %p1379_p3 = por %p1378_p5, %p1377_p9 }
  0x3a   : > { %p1373_p11 = pneg %p1372_p1 }
  0x3c   : > { %p1380_p13 = pnand %p1379_p3, %p1373_p11 }
  0x3e   : > { %1383 = shalt.err (!%p1380_p13)
}
  0x3f   : > { %s2168_s24 = smov 64   ;;  %s2169_s20 = smov 4  }
  0x40   : > { %1161 = dma.hbm_to_vmem [thread:$0]  (!%p1797_p2), %s2199_s3, 2048, %s245_s27, [#allocation7], %s2168_s24, %s2168_s24, %s2169_s20  }
  0x41   : > { %s2200_s5 = sld [smem:[#allocation29_spill]] }
  0x47   : > { %s1384_s23 = scalar_lea.hbm %s2200_s5, 1024 }
  0x48   : > { %p1385_p1 = scmp.ne.s32.totalorder %s2200_s5, %s1384_s23  ;;  %p1391_p9 = scmp.lt.u32.totalorder %s1384_s23, %s2200_s5 }
  0x4a   : > { %p1387_p3 = pnand %p1385_p1, %p1358_p6 }
  0x4c   : > { %p1388_p5 = pneg %p1387_p3 }
  0x4e   : > { %p1393_p11 = pnand %p1391_p9, %p1388_p5 }
  0x50   : > { %1396 = shalt.err (!%p1393_p11)
}
  0x51   : > { %s1397_s27 = scalar_lea.vmem %s1801_s17, 1024  ;;  %p1405_p8 = scmp.lt.s32.totalorder %s1801_s17, %s1801_s17 }
  0x52   : > { %p1398_p13 = scmp.ne.s32.totalorder %s1801_s17, %s1397_s27  ;;  %p1406_p10 = scmp.lt.s32.totalorder %s1397_s27, %s1397_s27 }
  0x54   : > { %p1400_p4 = pnand %p1398_p13, %p1358_p6  ;;  %p1407_p12 = por %p1406_p10, %p1405_p8 }
  0x56   : > { %p1401_p7 = pneg %p1400_p4 }
  0x58   : > { %p1408_p0 = pnand %p1407_p12, %p1401_p7 }
  0x5a   : > { %1411 = shalt.err (!%p1408_p0)
}
  0x5b   : > { %1164 = dma.hbm_to_vmem [thread:$0]  (!%p1797_p2), %s2200_s5, 1024, %s1801_s17, [#allocation10], %s2168_s24, %s2168_s24, %s2169_s20  }
  0x5c   : > { %s36_s10 = sadd.s32 1, %s1622_s12  ;;  %s39_s30 = sadd.s32 1, %s1626_s13 }
  0x5d   : > { %p37_p6 = scmp.ge.s32.totalorder %s36_s10, 3  ;;  %s48_s6 = sadd.s32 1, %s1610_s9 }
  0x5e   : > { %p55_p1 = scmp.ne.s32.totalorder %s1610_s9, %s1606_s8  ;;  %p2178_p3 = scmp.eq.s32.totalorder %s1630_s14, 0 }
  0x5f   : > { %s2253_s10 = smov (%p37_p6, %s36_s10), 0  ;;  %s2255_s30 = smov (!%p37_p6, %s39_s30), %s1626_s13 }
  0x60   : > { %2201 = sst [smem:[#allocation25_spill]] %s2253_s10  ;;  %s1867_s7 = ssub.s32 %s1622_s12, %s2253_s10 }
  0x61   : > { %p1871_p2 = por %p2178_p3, %p55_p1  ;;  %p41_p5 = scmp.ge.s32.totalorder %s2255_s30, 2 }
  0x62   : > { %p72_p9 = scmp.eq.s32.totalorder %s1867_s7, 0  ;;  %p2177_p11 = scmp.lt.s32.totalorder %s1630_s14, 6 }
  0x63   : > { %s277_s11 = sand.u32 1, %s1610_s9   ;;  %s2257_s30 = smov (%p41_p5, %s2255_s30), 0 }
  0x64   : > { %s1025_s21 = sshll.u32 %s277_s11, 3  ;;  %s43_s23 = ssub.s32 %s1626_s13, %s2257_s30 }
  0x65   : > { %s45_s16 = sor.u32 %s1867_s7, %s43_s23  ;;  %p203_p13 = scmp.eq.s32.totalorder %s43_s23, 0 }
  0x66   : > { %p46_p4 = scmp.eq.s32.totalorder %s45_s16, 0  ;;  %s1143_s27 = smul.u32 6, %s1626_s13 }
  0x67   : > { %s2203_s2 = sadd.s32 1, %s1586_s26  ;;  %s281_s3 = scalar_lea.vmem [#allocation3], %s1025_s21 }
  0x68   : > { %s1887_s4 = scalar_select %p203_p13, %s1586_s26, %s2203_s2  }
  0x69   : > { %s1890_s24 = scalar_select %p46_p4, %s1610_s9, %s48_s6  }
  0x6a   : > { %s287_s20 = sadd.s32 %s1622_s12, %s1143_s27  ;;  %s290_s5 = sshll.u32 %s281_s3, 4  ;;  %s1893_s5 = int_to_ptr.vmem [resolvable:$true] %s290_s5 }
  0x6b   : > { %s1028_s10 = sshll.u32 %s287_s20, 6  ;;  %p1904_p7 = pnand %p2177_p11, %p1871_p2 }
  0x6c   : > { %s1898_s15 = scalar_lea.hbm %s2150_s0, %s1028_s10  ;;  %s1908_s3 = scalar_lea.sflag [#allocation4], %s277_s11 }
  0x6d   : > { %s1412_s20 = scalar_lea.hbm %s1898_s15, 128  ;;  %p1414_p10 = pneg %p1904_p7 }
  0x6e   : > { %p1413_p8 = scmp.ne.s32.totalorder %s1898_s15, %s1412_s20  ;;  %s1417_s10 = scalar_lea.hbm %s2150_s0, 768 }
  0x6f   : > { %p1418_p6 = scmp.lt.u32.totalorder %s1898_s15, %s2150_s0  ;;  %p1419_p1 = scmp.lt.u32.totalorder %s1417_s10, %s1412_s20 }
  0x70   : > { %p1415_p12 = pnand %p1414_p10, %p1413_p8  ;;  %p1421_p5 = scmp.lt.u32.totalorder %s1412_s20, %s1898_s15 }
  0x71   : > { %p1420_p2 = por %p1419_p1, %p1418_p6 }
  0x72   : > { %p1416_p0 = pneg %p1415_p12 }
  0x73   : > { %p1422_p13 = por %p1421_p5, %p1420_p2 }
  0x75   : > { %p1423_p4 = pnand %p1422_p13, %p1416_p0 }
  0x77   : > { %1426 = shalt.err (!%p1423_p4)
}
  0x78   : > { %s1427_s11 = scalar_lea.vmem %s1893_s5, 128  ;;  %s1636_s23 = smov [#allocation3]  }
  0x79   : > { %p1428_p8 = scmp.ne.s32.totalorder %s1893_s5, %s1427_s11  ;;  %s1432_s16 = sshll.u32 %s1636_s23, 4  ;;  %s1433_s16 = int_to_ptr.vmem [resolvable:$false] %s1432_s16 }
  0x7a   : > { %s1434_s27 = scalar_lea.vmem %s1433_s16, 256  ;;  %p1435_p3 = scmp.lt.s32.totalorder %s1893_s5, %s1433_s16 }
  0x7b   : > { %p1430_p12 = pnand %p1428_p8, %p1414_p10  ;;  %p1436_p6 = scmp.lt.s32.totalorder %s1434_s27, %s1427_s11 }
  0x7d   : > { %p1431_p11 = pneg %p1430_p12  ;;  %p1437_p1 = por %p1436_p6, %p1435_p3 }
  0x7f   : > { %p1438_p2 = pnand %p1437_p1, %p1431_p11 }
  0x81   : > { %1441 = shalt.err (!%p1438_p2)
}
  0x82   : > { %s1637_s2 = smov 192   ;;  %s2205_s20 = smov 4  }
  0x83   : > { %s2206_s25 = smov 64   ;;  %s74_s19 = sadd.s32 1, %s1598_s29 }
  0x84   : > { %1168 = dma.hbm_to_vmem [thread:$0]  (!%p1904_p7), %s1898_s15, 128, %s1893_s5, %s1908_s3, %s1637_s2, %s2206_s25, %s2205_s20  }
  0x85   : > { %p81_p3 = scmp.ne.s32.totalorder %s1598_s29, %s1594_s28  ;;  %p2207_p11 = scmp.eq.s32.totalorder %s1630_s14, 0 }
  0x86   : > { %s1944_s6 = scalar_select %p72_p9, %s1598_s29, %s74_s19  }
  0x87   : > { %p83_p10 = por %p81_p3, %p2207_p11  ;;  %s300_s10 = sand.u32 1, %s1630_s14  }
  0x88   : > { %s302_s17 = sand.u32 1, %s1598_s29   ;;  %s1090_s11 = sshll.u32 %s1622_s12, 11 }
  0x89   : > { %s1029_s21 = sshll.u32 %s302_s17, 7  ;;  %s1954_s27 = scalar_lea.hbm %s2151_s1, %s1090_s11 }
  0x8a   : > { %s304_s5 = scalar_lea.vmem [#allocation6], %s1029_s21  ;;  %p2208_p7 = scmp.lt.s32.totalorder %s1630_s14, 6 }
  0x8b   : > { %s312_s15 = sshll.u32 %s304_s5, 4  ;;  %s1964_s3 = scalar_lea.sflag [#allocation7], %s300_s10  ;;  %s1962_s15 = int_to_ptr.vmem [resolvable:$true] %s312_s15 }
  0x8c   : > { %p1958_p9 = pnand %p2208_p7, %p83_p10  ;;  %s1442_s2 = scalar_lea.hbm %s1954_s27, 2048 }
  0x8d   : > { %p1443_p0 = scmp.ne.s32.totalorder %s1954_s27, %s1442_s2  ;;  %s1447_s19 = scalar_lea.hbm %s2151_s1, 6144 }
  0x8e   : > { %p1444_p5 = pneg %p1958_p9  ;;  %p1448_p8 = scmp.lt.u32.totalorder %s1954_s27, %s2151_s1 }
  0x8f   : > { %p1449_p12 = scmp.lt.u32.totalorder %s1447_s19, %s1442_s2  ;;  %p1451_p1 = scmp.lt.u32.totalorder %s1442_s2, %s1954_s27 }
  0x90   : > { %p1445_p13 = pnand %p1444_p5, %p1443_p0 }
  0x91   : > { %p1450_p6 = por %p1449_p12, %p1448_p8 }
  0x92   : > { %p1446_p4 = pneg %p1445_p13 }
  0x93   : > { %p1452_p2 = por %p1451_p1, %p1450_p6 }
  0x95   : > { %p1453_p3 = pnand %p1452_p2, %p1446_p4 }
  0x97   : > { %1456 = shalt.err (!%p1453_p3)
}
  0x98   : > { %s1457_s10 = scalar_lea.vmem %s1962_s15, 2048  ;;  %s1638_s11 = smov [#allocation6]  }
  0x99   : > { %p1458_p11 = scmp.ne.s32.totalorder %s1962_s15, %s1457_s10  ;;  %s1462_s23 = sshll.u32 %s1638_s11, 4  ;;  %s1463_s23 = int_to_ptr.vmem [resolvable:$false] %s1462_s23 }
  0x9a   : > { %s1464_s16 = scalar_lea.vmem %s1463_s23, 4096  ;;  %p1465_p0 = scmp.lt.s32.totalorder %s1962_s15, %s1463_s23 }
  0x9b   : > { %p1460_p10 = pnand %p1458_p11, %p1444_p5  ;;  %p1466_p13 = scmp.lt.s32.totalorder %s1464_s16, %s1457_s10 }
  0x9d   : > { %p1461_p7 = pneg %p1460_p10  ;;  %p1467_p8 = por %p1466_p13, %p1465_p0 }
  0x9f   : > { %p1468_p12 = pnand %p1467_p8, %p1461_p7 }
  0xa1   : > { %1471 = shalt.err (!%p1468_p12)
}
  0xa2   : > { %s1639_s5 = smov 128   ;;  %s1640_s2 = smov 8  }
  0xa3   : > { %1171 = dma.hbm_to_vmem [thread:$0]  (!%p1958_p9), %s1954_s27, 2048, %s1962_s15, %s1964_s3, %s1639_s5, %s1639_s5, %s1640_s2  }
  0xa4   : > { %p2210_p5 = scmp.ne.s32.totalorder %s2197_s22, 0 }
  0xa5   : > { %s326_s20 = sand.u32 (!%p2210_p5), 1, %s1606_s8   ;;  %p2211_p4 = scmp.ne.s32.totalorder (!%p2210_p5), %s2190_s18, 0 }
  0xa6   : > { %324 = sbr.rel (%p2210_p5) target bundleno = 938 (0x3aa), region = 48  ;;  %s1995_s25 = sshll.u32 (!%p2210_p5), %s326_s20, 3 }
  0xa7   : > { %s327_s19 = scalar_lea.sflag (!%p2210_p5), [#allocation4], %s326_s20  ;;  %s330_s17 = scalar_lea.vmem (!%p2210_p5), [#allocation3], %s1995_s25 }
  0xad   : > { %1557 = dma.done.wait (%p2211_p4), %s327_s19, 128  }
  0xae   : > { %1559 = vsyncadd (%p2211_p4), %s327_s19, 4294967168  ;;  %s2212_s21 = sld [smem:[#allocation21_spill]]  ;;  %s2213_s7 = sld [smem:[#allocation22_spill]] }
  0xaf   : > { %s337_s15 = sand.u32 1, %s1594_s28  }
  0xb0   : > { %s1035_s22 = sshll.u32 %s337_s15, 7 }
  0xb1   : > { %s2004_s10 = scalar_lea.vmem [#allocation6], %s1035_s22 }
  0xb4   : > { %s335_s27 = sand.u32 1, %s2212_s21   ;;  %p2214_p9 = scmp.ne.s32.totalorder %s2213_s7, 0 }
  0xb5   : > { %s336_s3 = scalar_lea.sflag [#allocation7], %s335_s27 }
  0xb6   : > { %1561 = dma.done.wait (%p2214_p9), %s336_s3, 2048  }
  0xb7   : > { %1563 = vsyncadd (%p2214_p9), %s336_s3, 4294965248  ;;  %p2215_p6 = scmp.eq.s32.totalorder %s2212_s21, 0 }
  0xb9   : > { %1565 = dma.done.wait (%p2215_p6), [#allocation7], 2048   ;;  %p2216_p1 = pmov %p2215_p6 }
  0xbb   : > { %1567 = vsyncadd (%p2216_p1), [#allocation7], 4294965248  ;;  %p2217_p2 = pmov %p2216_p1 }
  0xbc   : > { %p2218_p3 = pmov %p2216_p1 }
  0xbd   : > { %1569 = dma.done.wait (%p2217_p2), [#allocation10], 1024  }
  0xbe   : > { %1571 = vsyncadd (%p2218_p3), [#allocation10], 4294966272  ;;  %s2219_s18 = sld [smem:[#allocation18_spill]]  ;;  %s2220_s5 = sld [smem:[#allocation19_spill]] }
  0xc4   : > { %s380_s11 = sand.u32 1, %s2219_s18   ;;  %p1039_p11 = scmp.ne.s32.totalorder %s2220_s5, 0 }
  0xc5   : > { %s1038_s23 = sshll.u32 %s380_s11, 4  ;;  %v1641_v0 = vmov (!%p1039_p11), 0.0  }
  0xc6   : > { %s2021_s16 = scalar_lea.vmem [#allocation11], %s1038_s23  ;;  %390 = sbr.rel (%p1039_p11) target bundleno = 205 (0xcd), region = 68  ;;  %391 = vst [vmem:[#allocation2] sm:$0xff] (!%p1039_p11), %v1641_v0  ;;  %392 = vst [vmem:[#allocation2 + $0x8] sm:$0xff] (!%p1039_p11), %v1641_v0 }
  0xc7   : > { %393 = vst [vmem:[#allocation2 + $0x10] sm:$0xff] (!%p1039_p11), %v1641_v0  ;;  %394 = vst [vmem:[#allocation2 + $0x18] sm:$0xff] (!%p1039_p11), %v1641_v0 }
  0xcd PF: > { %v1307_v1 = vld [vmem:[%s2004_s10 + $0x4] ss:$8 sps:$4 sm:$0xff]   ;;  %v1309_v2 = vld [vmem:[%s2004_s10] ss:$8 sps:$4 sm:$0xff]   ;;  %v1642_v3 = vmov 0   ;;  %v1331_v18 = vld [vmem:[%s330_s17] sm:$0xff]  }
  0xce   : > { %535 = vmatprep.mubr.bf16.mxu0 %v1642_v3  ;;  %503 = vmatprep.subr.bf16.mxu0 %v1307_v1  ;;  %v1310_v4 = vld [vmem:[%s2004_s10 + $0x14] ss:$8 sps:$4 sm:$0xff]   ;;  %v1312_v5 = vld [vmem:[%s2004_s10 + $0x10] ss:$8 sps:$4 sm:$0xff]   ;;  %v1313_v6 = vld [vmem:[%s2004_s10 + $0x24] ss:$8 sps:$4 sm:$0xff]  }
  0xcf   : > { %504 = vmatpush1.bf16.msra.mxu0 %v1309_v2  ;;  %v1315_v7 = vld [vmem:[%s2004_s10 + $0x20] ss:$8 sps:$4 sm:$0xff]   ;;  %v1316_v8 = vld [vmem:[%s2004_s10 + $0x34] ss:$8 sps:$4 sm:$0xff]   ;;  %v1318_v9 = vld [vmem:[%s2004_s10 + $0x30] ss:$8 sps:$4 sm:$0xff]  }
  0xd0   : > { %505 = vmatprep.subr.bf16.mxu0 %v1310_v4  ;;  %v1319_v10 = vld [vmem:[%s2004_s10 + $0x44] ss:$8 sps:$4 sm:$0xff]   ;;  %v1321_v11 = vld [vmem:[%s2004_s10 + $0x40] ss:$8 sps:$4 sm:$0xff]   ;;  %v1322_v12 = vld [vmem:[%s2004_s10 + $0x54] ss:$8 sps:$4 sm:$0xff]  }
  0xd1   : > { %v1324_v13 = vld [vmem:[%s2004_s10 + $0x50] ss:$8 sps:$4 sm:$0xff]   ;;  %v1325_v14 = vld [vmem:[%s2004_s10 + $0x64] ss:$8 sps:$4 sm:$0xff]   ;;  %v1327_v15 = vld [vmem:[%s2004_s10 + $0x60] ss:$8 sps:$4 sm:$0xff]  }
  0xd2   : > { %v1328_v16 = vld [vmem:[%s2004_s10 + $0x74] ss:$8 sps:$4 sm:$0xff]   ;;  %v1330_v17 = vld [vmem:[%s2004_s10 + $0x70] ss:$8 sps:$4 sm:$0xff]   ;;  %v397_v22 = vld [vmem:[#allocation2 + $0x10] sm:$0xff]  ;;  %s2221_s2 = sld [smem:[#allocation19_spill]] }
  0xd3   : > { %506 = vmatpush1.bf16.msra.mxu0 %v1312_v5  ;;  %v395_v19 = vld [vmem:[#allocation2] sm:$0xff]  ;;  %v396_v20 = vld [vmem:[#allocation2 + $0x8] sm:$0xff]  ;;  %v398_v25 = vld [vmem:[#allocation2 + $0x18] sm:$0xff] }
  0xd4   : > { %507 = vmatprep.subr.bf16.mxu0 %v1313_v6 }
  0xd7   : > { %508 = vmatpush1.bf16.msra.mxu0 %v1315_v7 }
  0xd8   : > { %509 = vmatprep.subr.bf16.mxu0 %v1316_v8  ;;  %p1057_p10 = scmp.ne.s32.totalorder %s2221_s2, 2 }
  0xd9   : > { %v1332_v31 = vld [vmem:[#allocation8 + $0x40] sm:$0xff] (!%p1057_p10)   ;;  %v1643_v33 = vmov (!%p1057_p10), 0.0   ;;  %v1334_v34 = vld [vmem:[#allocation8 + $0x48] sm:$0xff] (!%p1057_p10)   ;;  %v1336_v36 = vld [vmem:[#allocation8 + $0x50] sm:$0xff] (!%p1057_p10)   ;;  %v564_v37 = vlaneseq (!%p1057_p10)  ;;  %s2222_s19 = sld [smem:[#allocation26_spill]] (!%p1057_p10)  ;;  %vm1644_vm0 = vmmov (!%p1057_p10), 0  }
  0xda   : > { %v1333_v32 = vld [vmem:[#allocation8] sm:$0xff] (!%p1057_p10)   ;;  %1123 = vmatprep.subr.bf16.mxu1 (!%p1057_p10), %v1643_v33  ;;  %v1335_v35 = vld [vmem:[#allocation8 + $0x8] sm:$0xff] (!%p1057_p10)   ;;  %v1337_v38 = vld [vmem:[#allocation8 + $0x10] sm:$0xff] (!%p1057_p10)   ;;  %1139 = vmatprep.mubr.msk.bf16.mxu1 (!%p1057_p10), %vm1644_vm0, %v1643_v33  ;;  %s2223_s7 = sld [smem:[#allocation28_spill]] (!%p1057_p10)  ;;  %s2224_s22 = sld [smem:[#allocation30_spill]] (!%p1057_p10) }
  0xdb   : > { %510 = vmatpush1.bf16.msra.mxu0 %v1318_v9  ;;  %v1338_v39 = vld [vmem:[#allocation8 + $0x58] sm:$0xff] (!%p1057_p10)   ;;  %v565_v40 = vshrl.u32 (!%p1057_p10), %v564_v37, 7  ;;  %v1340_v42 = vld [vmem:[#allocation8 + $0x60] sm:$0xff] (!%p1057_p10)   ;;  %v1342_v46 = vld [vmem:[#allocation8 + $0x68] sm:$0xff] (!%p1057_p10)  }
  0xdc   : > { %511 = vmatprep.subr.bf16.mxu0 %v1319_v10  ;;  %v1339_v41 = vld [vmem:[#allocation8 + $0x18] sm:$0xff] (!%p1057_p10)   ;;  %v1341_v44 = vld [vmem:[#allocation8 + $0x20] sm:$0xff] (!%p1057_p10)   ;;  %v1343_v50 = vld [vmem:[#allocation8 + $0x28] sm:$0xff] (!%p1057_p10)  }
  0xdd   : > { %v570_v43 = vsub.s32 (!%p1057_p10), 1, %v565_v40  ;;  %v566_v45 = vsub.s32 (!%p1057_p10), 0, %v565_v40  ;;  %v1344_v53 = vld [vmem:[#allocation8 + $0x70] sm:$0xff] (!%p1057_p10)   ;;  %v1348_v55 = vld [vmem:[#allocation9] sm:$0xff] (!%p1057_p10)   ;;  %v1349_v59 = vld [vmem:[#allocation9 + $0x8] sm:$0xff] (!%p1057_p10)  }
  0xde   : > { %1124 = vmatpush3.bf16.msra.mxu1 (!%p1057_p10), %v1348_v55  ;;  %v1345_v60 = vld [vmem:[#allocation8 + $0x30] sm:$0xff] (!%p1057_p10)   ;;  %v1346_v63 = vld [vmem:[#allocation8 + $0x78] sm:$0xff] (!%p1057_p10)   ;;  %v1352_v9 = vld [vmem:[#allocation9 + $0x20] sm:$0xff] (!%p1057_p10)  }
  0xdf   : > { %512 = vmatpush1.bf16.msra.mxu0 %v1321_v11  ;;  %v562_v49 = vld [vmem:[%s2222_s19] sm:$0x3] (!%p1057_p10)  ;;  %1125 = vmatprep.subr.bf16.mxu1 (!%p1057_p10), %v1643_v33  ;;  %v1347_v6 = vld [vmem:[#allocation8 + $0x38] sm:$0xff] (!%p1057_p10)   ;;  %v1353_v10 = vld [vmem:[#allocation9 + $0x28] sm:$0xff] (!%p1057_p10)  }
  0xe0   : > { %513 = vmatprep.subr.bf16.mxu0 %v1322_v12  ;;  %v571_v51 = vrot.slane (!%p1057_p10), %v562_v49, %v570_v43  ;;  %v567_v54 = vrot.slane (!%p1057_p10), %v562_v49, %v566_v45  ;;  %v1350_v3 = vld [vmem:[#allocation9 + $0x10] sm:$0xff] (!%p1057_p10)   ;;  %v1351_v7 = vld [vmem:[#allocation9 + $0x18] sm:$0xff] (!%p1057_p10)  }
  0xe1   : > { %v1354_v11 = vld [vmem:[#allocation9 + $0x30] sm:$0xff] (!%p1057_p10)   ;;  %v1355_v12 = vld [vmem:[#allocation9 + $0x38] sm:$0xff] (!%p1057_p10)  }
  0xe2   : > { %1126 = vmatpush3.bf16.msra.mxu1 (!%p1057_p10), %v1349_v59 }
  0xe3   : > { %514 = vmatpush1.bf16.msra.mxu0 %v1324_v13  ;;  %1127 = vmatprep.subr.bf16.mxu1 (!%p1057_p10), %v1643_v33 }
  0xe4   : > { %515 = vmatprep.subr.bf16.mxu0 %v1325_v14  ;;  %v1058_v14 = vld [vmem:[%s2223_s7] ss:$0 sm:$0xff] (!%p1057_p10) }
  0xe6   : > { %1128 = vmatpush3.bf16.msra.mxu1 (!%p1057_p10), %v1350_v3 }
  0xe7   : > { %516 = vmatpush1.bf16.msra.mxu0 %v1327_v15  ;;  %1129 = vmatprep.subr.bf16.mxu1 (!%p1057_p10), %v1643_v33 }
  0xe8   : > { %517 = vmatprep.subr.bf16.mxu0 %v1328_v16 }
  0xea   : > { %1130 = vmatpush3.bf16.msra.mxu1 (!%p1057_p10), %v1351_v7 }
  0xeb   : > { %518 = vmatpush1.bf16.msra.mxu0 %v1330_v17  ;;  %1131 = vmatprep.subr.bf16.mxu1 (!%p1057_p10), %v1643_v33 }
  0xec   : > { %1092 = vmatprep.subr.bf16.mxu0 (!%p1057_p10), %v1332_v31 }
  0xee   : > { %536 = vmatmul.mubr.bf16.vlgmr.msra.gmra.mrb[0].mxu0 %v1331_v18  ;;  %1132 = vmatpush3.bf16.msra.mxu1 (!%p1057_p10), %v1352_v9 }
  0xef   : > { %1093 = vmatpush3.bf16.msra.mxu0 (!%p1057_p10), %v1333_v32  ;;  %1133 = vmatprep.subr.bf16.mxu1 (!%p1057_p10), %v1643_v33 }
  0xf0   : > { %1094 = vmatprep.subr.bf16.mxu0 (!%p1057_p10), %v1334_v34 }
  0xf2   : > { %1134 = vmatpush3.bf16.msra.mxu1 (!%p1057_p10), %v1353_v10 }
  0xf3   : > { %1095 = vmatpush3.bf16.msra.mxu0 (!%p1057_p10), %v1335_v35  ;;  %1135 = vmatprep.subr.bf16.mxu1 (!%p1057_p10), %v1643_v33 }
  0xf4   : > { %1096 = vmatprep.subr.bf16.mxu0 (!%p1057_p10), %v1336_v36 }
  0xf6   : > { %1136 = vmatpush3.bf16.msra.mxu1 (!%p1057_p10), %v1354_v11 }
  0xf7   : > { %1097 = vmatpush3.bf16.msra.mxu0 (!%p1057_p10), %v1337_v38  ;;  %1137 = vmatprep.subr.bf16.mxu1 (!%p1057_p10), %v1643_v33 }
  0xf8   : > { %1098 = vmatprep.subr.bf16.mxu0 (!%p1057_p10), %v1338_v39 }
  0xfa   : > { %1138 = vmatpush3.bf16.msra.mxu1 (!%p1057_p10), %v1355_v12 }
  0xfb   : > { %1099 = vmatpush3.bf16.msra.mxu0 (!%p1057_p10), %v1339_v41 }
  0xfc   : > { %1100 = vmatprep.subr.bf16.mxu0 (!%p1057_p10), %v1340_v42 }
  0xff   : > { %1101 = vmatpush3.bf16.msra.mxu0 (!%p1057_p10), %v1341_v44 }
 0x100   : > { %1102 = vmatprep.subr.bf16.mxu0 (!%p1057_p10), %v1342_v46 }
 0x103   : > { %1103 = vmatpush3.bf16.msra.mxu0 (!%p1057_p10), %v1343_v50 }
 0x104   : > { %1104 = vmatprep.subr.bf16.mxu0 (!%p1057_p10), %v1344_v53 }
 0x107   : > { %1105 = vmatpush3.bf16.msra.mxu0 (!%p1057_p10), %v1345_v60 }
 0x108   : > { %1106 = vmatprep.subr.bf16.mxu0 (!%p1057_p10), %v1346_v63 }
 0x10b   : > { %1107 = vmatpush3.bf16.msra.mxu0 (!%p1057_p10), %v1347_v6 }
 0x1c1   : > { %v537_v21 = vpop.f32.mrb[0].mxu0  ;;  %557 = sbr.rel (%p1057_p10) target bundleno = 910 (0x38e), region = 72 }
 0x1c2   : > { %v546_v23 = vadd.f32 %v537_v21, %v395_v19  ;;  %v539_v24 = vpop.f32.mrb[1].mxu0 }
 0x1c3   : > { %v547_v26 = vadd.f32 %v539_v24, %v396_v20  ;;  %v541_v27 = vpop.f32.mrb[2].mxu0 }
 0x1c4   : > { %550 = vst [vmem:[#allocation2] sm:$0xff] %v546_v23  ;;  %v548_v28 = vadd.f32 %v541_v27, %v397_v22  ;;  %v543_v29 = vpop.f32.mrb[3].mxu0 }
 0x1c5   : > { %551 = vst [vmem:[#allocation2 + $0x8] sm:$0xff] %v547_v26  ;;  %v549_v30 = vadd.f32 %v543_v29, %v398_v25  ;;  %v1075_v25 = vld [vmem:[%s2224_s22] ss:$0 sm:$0xff] (!%p1057_p10) }
 0x1c6   : > { %552 = vst [vmem:[#allocation2 + $0x10] sm:$0xff] %v548_v28 }
 0x1c7   : > { %553 = vst [vmem:[#allocation2 + $0x18] sm:$0xff] %v549_v30 }
 0x1cb   : > { %v558_v52 = vld [vmem:[#allocation2] sm:$0xff] }
 0x1cc   : > { %v559_v47 = vld [vmem:[#allocation2 + $0x8] sm:$0xff]  ;;  %v574_v0 = vadd.f32 %v567_v54, %v558_v52 }
 0x1cd   : > { %v575_v56 = vadd.f32 %v571_v51, %v559_v47  ;;  %v560_v58 = vld [vmem:[#allocation2 + $0x10] sm:$0xff] }
 0x1ce   : > { %v561_v48 = vld [vmem:[#allocation2 + $0x18] sm:$0xff]  ;;  %v576_v1 = vadd.f32 %v567_v54, %v560_v58  ;;  %v578_v4 = vmax.f32 %v574_v0, 0.0 }
 0x1cf   : > { %v577_v57 = vadd.f32 %v571_v51, %v561_v48  ;;  %v579_v61 = vmax.f32 %v575_v56, 0.0 }
 0x1d0   : > { %v580_v5 = vmax.f32 %v576_v1, 0.0 }
 0x1d1   : > { %v581_v62 = vmax.f32 %v577_v57, 0.0 }
 0x1d2   : > { %v582_v8 = vpack.c.bf16 %v580_v5, %v578_v4 }
 0x1d3   : > { %v583_v2 = vpack.c.bf16 %v581_v62, %v579_v61 }
 0x1d5   : > { %751 = vmatprep.mubr.bf16.mxu0 %v583_v2 }
 0x1d6   : > { %752 = vmatmul.mubr.bf16.vlgmr.msra.gmra.mrb[0].mxu0 %v582_v8 }
 0x2a9   : > { %v1108_v13 = vpop.f32.mrb[0].mxu0 }
 0x2aa   : > { %v1109_v15 = vpop.f32.mrb[1].mxu0 }
 0x2ab   : > { %v1110_v16 = vadd.f32 %v1109_v15, %v1108_v13  ;;  %v1111_v17 = vpop.f32.mrb[2].mxu0 }
 0x2ac   : > { %v1112_v18 = vpop.f32.mrb[3].mxu0 }
 0x2ad   : > { %v754_v19 = vadd.f32 %v1110_v16, %v1058_v14  ;;  %v1113_v20 = vadd.f32 %v1112_v18, %v1111_v17 }
 0x2af   : > { %v757_v21 = vadd.f32 %v1113_v20, %v1058_v14  ;;  %v760_v22 = vmax.f32 %v754_v19, 0.0 }
 0x2b1   : > { %v761_v23 = vmax.f32 %v757_v21, 0.0 }
 0x2b3   : > { %v762_v24 = vpack.c.bf16 %v761_v23, %v760_v22 }
 0x2b5   : > { %1140 = vmatmul.mubr.bf16.vlgmr.msra.gmra.mrb[0].mxu1 %v762_v24 }
 0x388   : > { %v868_v26 = vpop.f32.mrb[0].mxu1 }
 0x389   : > { %v869_v27 = vadd.f32 %v1075_v25, %v868_v26  ;;  %v1141_v28 = vpop.f32.mrb[1].mxu1 }
 0x38a   : > { %v871_v29 = vpop.f32.mrb[2].mxu1 }
 0x38b   : > { %875 = vst [vmem:[%s2021_s16] sm:$0xff] %v869_v27  ;;  %v872_v30 = vadd.f32 %v1075_v25, %v871_v29  ;;  %v1142_v31 = vpop.f32.mrb[3].mxu1 }
 0x38d   : > { %876 = vst [vmem:[%s2021_s16 + $0x8] sm:$0xff] %v872_v30 }
 0x38e PF: > { %s2225_s3 = sld [smem:[#allocation20_spill]]  ;;  %s2227_s18 = sld [smem:[#allocation23_spill]] }
 0x38f   : > { %s2228_s20 = sld [smem:[#allocation31_spill]]  ;;  %s891_s19 = sshll.u32 %s2021_s16, 4  ;;  %s2070_s19 = int_to_ptr.vmem [resolvable:$true] %s891_s19 }
 0x390   : > { %s2074_s17 = scalar_lea.sflag [#allocation5], %s380_s11  ;;  %s1472_s21 = scalar_lea.vmem %s2070_s19, 256 }
 0x391   : > { %p1473_p7 = scmp.ne.s32.totalorder %s2070_s19, %s1472_s21  ;;  %s1645_s7 = smov [#allocation11]  }
 0x392   : > { %s1476_s27 = sshll.u32 %s1645_s7, 4  ;;  %s1477_s27 = int_to_ptr.vmem [resolvable:$false] %s1476_s27 }
 0x393   : > { %s1478_s15 = scalar_lea.vmem %s1477_s27, 512  ;;  %p1479_p12 = scmp.lt.s32.totalorder %s2070_s19, %s1477_s27 }
 0x394   : > { %s1091_s23 = sshll.u32 %s2225_s3, 8  ;;  %p2229_p0 = scmp.ne.s32.totalorder %s2227_s18, 0 }
 0x395   : > { %s2067_s25 = scalar_lea.hbm %s2228_s20, %s1091_s23  ;;  %p1480_p5 = scmp.lt.s32.totalorder %s1478_s15, %s1472_s21 }
 0x396   : > { %p1474_p13 = pnand %p1473_p7, %p2229_p0 }
 0x397   : > { %p1481_p4 = por %p1480_p5, %p1479_p12 }
 0x398   : > { %p1475_p8 = pneg %p1474_p13 }
 0x39a   : > { %p1482_p9 = pnand %p1481_p4, %p1475_p8 }
 0x39c   : > { %1485 = shalt.err (!%p1482_p9)
}
 0x39d   : > { %s1486_s11 = scalar_lea.hbm %s2067_s25, 256  ;;  %s1490_s3 = scalar_lea.hbm %s2228_s20, 512 }
 0x39e   : > { %p1487_p6 = scmp.ne.s32.totalorder %s2067_s25, %s1486_s11  ;;  %p1491_p3 = scmp.lt.u32.totalorder %s2067_s25, %s2228_s20 }
 0x39f   : > { %p1492_p11 = scmp.lt.u32.totalorder %s1490_s3, %s1486_s11  ;;  %p1494_p7 = scmp.lt.u32.totalorder %s1486_s11, %s2067_s25 }
 0x3a0   : > { %p1488_p1 = pnand %p1487_p6, %p2229_p0 }
 0x3a1   : > { %p1493_p10 = por %p1492_p11, %p1491_p3 }
 0x3a2   : > { %p1489_p2 = pneg %p1488_p1 }
 0x3a3   : > { %p1495_p13 = por %p1494_p7, %p1493_p10 }
 0x3a5   : > { %p1496_p8 = pnand %p1495_p13, %p1489_p2 }
 0x3a7   : > { %1499 = shalt.err (!%p1496_p8)
}
 0x3a8   : > { %s1646_s5 = smov 128   ;;  %s1647_s2 = smov 8  }
 0x3a9   : > { %1156 = dma.vmem_to_hbm [thread:$0]  (%p2229_p0), %s2070_s19, 256, %s2067_s25, %s2074_s17, %s1646_s5, %s1646_s5, %s1647_s2  }
 0x3aa PF: > { %s2230_s21 = sld [smem:[#allocation17_spill]]  ;;  %s2231_s7 = sld [smem:[#allocation24_spill]] }
 0x3ab   : > { %p1181_p12 = scmp.ge.s32.totalorder %s1630_s14, 2 }
 0x3b0   : > { %s906_s27 = sand.u32 1, %s2230_s21   ;;  %p2232_p5 = scmp.ne.s32.totalorder %s2231_s7, 0 }
 0x3b1   : > { %s907_s15 = scalar_lea.sflag [#allocation5], %s906_s27 }
 0x3b2   : > { %p1173_p4 = pnand %p1181_p12, %p2232_p5 }
 0x3b4   : > { %1573 = dma.done.wait (!%p1173_p4), %s907_s15, 256  }
 0x3b5   : > { %1575 = vsyncadd (!%p1173_p4), %s907_s15, 4294967040  ;;  %s27_s14 = sadd.s32 1, %s1630_s14   ;;  %s2234_s16 = sld [smem:[#allocation18_spill]] }
 0x3b6   : > { %p2103_p9 = scmp.ge.s32.totalorder %s27_s14, 8   ;;  %s2235_s18 = smov %s1890_s24 }
 0x3b7   : > { %s2236_s19 = sld [smem:[#allocation25_spill]]  ;;  %s2237_s17 = smov %s2257_s30 }
 0x3b8   : > { %s2240_s25 = smov %s1586_s26  ;;  %s2241_s26 = smov %s1887_s4 }
 0x3b9   : > { %s2242_s27 = smov %s1594_s28  ;;  %s2243_s28 = smov %s1598_s29 }
 0x3ba   : > { %s2244_s29 = smov %s1944_s6  ;;  %s2245_s30 = smov %s1606_s8 }
 0x3bb   : > { %s2239_s24 = smov %s2234_s16  ;;  %s2246_s8 = smov %s1610_s9 }
 0x3bc   : > { %s2247_s9 = smov %s2235_s18  ;;  %s2248_s10 = smov %s1622_s12 }
 0x3bd   : > { %s2249_s11 = smov %s1626_s13  ;;  %s2250_s12 = smov %s2236_s19 }
 0x3be   : > { %s2251_s13 = smov %s2237_s17  ;;  %26 = sbr.rel (!%p2103_p9) target bundleno = 20 (0x14), region = 122 }
 0x3c5   :  { %912 = vsyncpa [#allocation4], 1 }
 0x3c6   :  { %914 = vsyncpa [#allocation4 + $0x1], 1 }
 0x3c7   :  { %915 = vsyncpa [#allocation7], 1 }
 0x3c8   :  { %917 = vsyncpa [#allocation7 + $0x1], 1 }
 0x3c9   :  { %918 = vsyncpa [#allocation10], 1 }
 0x3ca   :  { %919 = vsyncpa [#allocation5], 1 }
 0x3cb   :  { %921 = vsyncpa [#allocation5 + $0x1], 1 }

// kernel: tpu_custom_call.1
= control target key start
LH: loop header
LB: loop body
LE: loop exit
PB: predicated region body
PF: predicated region fallthrough
CT: control target
= control target key end

     0   :  { %s2150_s0 = inlined_call_operand.hbm [shape: bf16[32,384], index: 0, kind: input, shape index: {}]   ;;  %s2151_s1 = inlined_call_operand.hbm [shape: bf16[384,256], index: 1, kind: input, shape index: {}]   ;;  %s2152_s2 = inlined_call_operand.vmem [shape: f32[1,256], index: 2, kind: input, shape index: {}]   ;;  %s2153_s3 = inlined_call_operand.hbm [shape: bf16[256,128], index: 3, kind: input, shape index: {}]   ;;  %s2154_s4 = inlined_call_operand.vmem [shape: f32[1,128], index: 4, kind: input, shape index: {}]   ;;  %s2155_s5 = inlined_call_operand.hbm [shape: bf16[128,128], index: 5, kind: input, shape index: {}]   ;;  %s2156_s6 = inlined_call_operand.vmem [shape: f32[1,128], index: 6, kind: input, shape index: {}]   ;;  %s2157_s7 = inlined_call_operand.hbm [shape: f32[32,128], index: 7, kind: output, shape index: {}]  }
   0x1   :  { %2179 = sst [smem:[#allocation26_spill]] %s2152_s2 }
   0x2   :  { %2180 = sst [smem:[#allocation27_spill]] %s2153_s3 }
   0x3   :  { %2181 = sst [smem:[#allocation28_spill]] %s2154_s4 }
   0x4   :  { %2182 = sst [smem:[#allocation29_spill]] %s2155_s5 }
   0x5   :  { %2183 = sst [smem:[#allocation30_spill]] %s2156_s6 }
   0x6   :  { %2184 = sst [smem:[#allocation31_spill]] %s2157_s7 }
   0x7   :  { %12 = vsyncpa [#allocation4], 0 }
   0x8   :  { %14 = vsyncpa [#allocation4 + $0x1], 0 }
   0x9   :  { %15 = vsyncpa [#allocation7], 0 }
   0xa   :  { %17 = vsyncpa [#allocation7 + $0x1], 0 }
   0xb   :  { %18 = vsyncpa [#allocation10], 0 }
   0xc   :  { %19 = vsyncpa [#allocation5], 0 }
   0xd   :  { %21 = vsyncpa [#allocation5 + $0x1], 0  ;;  %s1688_s24 = smov 0   ;;  %s1690_s25 = smov 0  }
   0xe   :  { %s1692_s26 = smov 0   ;;  %s1694_s27 = smov 0  }
   0xf   :  { %s1696_s28 = smov 0   ;;  %s1698_s29 = smov 0  }
  0x10   :  { %s1700_s30 = smov 0   ;;  %s1702_s8 = smov 0  }
  0x11   :  { %s1704_s9 = smov 0   ;;  %s1706_s10 = smov 0  }
  0x12   :  { %s1708_s11 = smov 0   ;;  %s1710_s12 = smov 0  }
  0x13   :  { %s1712_s13 = smov 0   ;;  %s1714_s14 = smov 0  }
  0x14 LB: > { %2185 = sst [smem:[#allocation17_spill]] %s1578_s24  ;;  %s1755_s15 = sadd.s32 4294967295, %s1630_s14   ;;  %s1630_s14 = sphi %s1714_s14, %s27_s14   ;;  %s1626_s13 = sphi %s1712_s13, %s2251_s13   ;;  %s1622_s12 = sphi %s1710_s12, %s2250_s12   ;;  %s1618_s11 = sphi %s1708_s11, %s2249_s11   ;;  %s1614_s10 = sphi %s1706_s10, %s2248_s10   ;;  %s1610_s9 = sphi %s1704_s9, %s2247_s9   ;;  %s1606_s8 = sphi %s1702_s8, %s2246_s8   ;;  %s1602_s30 = sphi %s1700_s30, %s2245_s30   ;;  %s1598_s29 = sphi %s1698_s29, %s2244_s29   ;;  %s1594_s28 = sphi %s1696_s28, %s2243_s28   ;;  %s1590_s27 = sphi %s1694_s27, %s2242_s27   ;;  %s1586_s26 = sphi %s1692_s26, %s2241_s26   ;;  %s1582_s25 = sphi %s1690_s25, %s2240_s25   ;;  %s1578_s24 = sphi %s1688_s24, %s2239_s24  }
  0x15   : > { %2186 = sst [smem:[#allocation18_spill]] %s1582_s25  ;;  %s1020_s16 = sadd.s32 4294967294, %s1630_s14  }
  0x16   : > { %2187 = sst [smem:[#allocation19_spill]] %s1614_s10  ;;  %p61_p0 = scmp.ne.s32.totalorder %s1606_s8, %s1602_s30 }
  0x17   : > { %2188 = sst [smem:[#allocation20_spill]] %s1618_s11  ;;  %p2163_p1 = scmp.eq.s32.totalorder %s1755_s15, 0 }
  0x18   : > { %2189 = sst [smem:[#allocation21_spill]] %s1755_s15  ;;  %p87_p2 = scmp.ne.s32.totalorder %s1594_s28, %s1590_s27 }
  0x19   : > { %p1764_p3 = por %p2163_p1, %p61_p0  ;;  %p215_p4 = scmp.ne.s32.totalorder %s1586_s26, %s1582_s25 }
  0x1a   : > { %p1772_p5 = por %p87_p2, %p2163_p1  ;;  %p216_p6 = scmp.eq.s32.totalorder %s1755_s15, 5 }
  0x1b   : > { %s2190_s18 = scalar_select %p1764_p3, 1, 0 }
  0x1c   : > { %s2191_s19 = scalar_select %p1772_p5, 1, 0 }
  0x1d   : > { %p221_p7 = scmp.ne.s32.totalorder %s1582_s25, %s1578_s24  ;;  %p222_p8 = scmp.eq.s32.totalorder %s1020_s16, 5 }
  0x1e   : > { %2192 = sst [smem:[#allocation22_spill]] %s2191_s19  ;;  %p1779_p9 = por %p216_p6, %p215_p4 }
  0x1f   : > { %p1021_p10 = scmp.ge.s32.totalorder %s1630_s14, 1  ;;  %p1784_p11 = por %p222_p8, %p221_p7 }
  0x20   : > { %s2193_s20 = scalar_select %p1779_p9, 1, 0 }
  0x21   : > { %s2195_s21 = scalar_select %p1784_p11, 1, 0 }
  0x22   : > { %2194 = sst [smem:[#allocation23_spill]] %s2193_s20  ;;  %p229_p12 = scmp.lt.s32.totalorder %s1630_s14, 7 }
  0x23   : > { %2196 = sst [smem:[#allocation24_spill]] %s2195_s21  ;;  %s1632_s23 = smov [#allocation8]  }
  0x24   : > { %p1789_p13 = pnand %p1021_p10, %p229_p12  ;;  %s244_s27 = sshll.u32 %s1632_s23, 4  ;;  %s245_s27 = int_to_ptr.vmem [resolvable:$true] %s244_s27 }
  0x25   : > { %s1633_s16 = smov [#allocation9]   ;;  %s2199_s3 = sld [smem:[#allocation27_spill]] }
  0x26   : > { %s2197_s22 = scalar_select %p1789_p13, 1, 0 }
  0x27   : > { %p1158_p0 = pneg %p1789_p13  ;;  %s260_s17 = sshll.u32 %s1633_s16, 4  ;;  %s1801_s17 = int_to_ptr.vmem [resolvable:$true] %s260_s17 }
  0x29   : > { %p1797_p2 = pnand %p1158_p0, %p2163_p1 }
  0x2b   : > { %s1356_s7 = scalar_lea.hbm %s2199_s3, 2048  ;;  %p1358_p6 = pneg %p1797_p2 }
  0x2c   : > { %p1357_p4 = scmp.ne.s32.totalorder %s2199_s3, %s1356_s7  ;;  %p1363_p10 = scmp.lt.u32.totalorder %s1356_s7, %s2199_s3 }
  0x2e   : > { %p1359_p7 = pnand %p1358_p6, %p1357_p4 }
  0x30   : > { %p1360_p8 = pneg %p1359_p7 }
  0x32   : > { %p1365_p12 = pnand %p1363_p10, %p1360_p8 }
  0x34   : > { %1368 = shalt.err (!%p1365_p12)
}
  0x35   : > { %s1369_s16 = scalar_lea.vmem %s245_s27, 2048  ;;  %p1377_p9 = scmp.lt.s32.totalorder %s245_s27, %s245_s27 }
  0x36   : > { %p1370_p0 = scmp.ne.s32.totalorder %s245_s27, %s1369_s16  ;;  %p1378_p5 = scmp.lt.s32.totalorder %s1369_s16, %s1369_s16 }
  0x38   : > { %p1372_p1 = pnand %p1370_p0, %p1358_p6  ;;  %p1379_p3 = por %p1378_p5, %p1377_p9 }
  0x3a   : > { %p1373_p11 = pneg %p1372_p1 }
  0x3c   : > { %p1380_p13 = pnand %p1379_p3, %p1373_p11 }
  0x3e   : > { %1383 = shalt.err (!%p1380_p13)
}
  0x3f   : > { %s2168_s24 = smov 64   ;;  %s2169_s20 = smov 4  }
  0x40   : > { %1161 = dma.hbm_to_vmem [thread:$0]  (!%p1797_p2), %s2199_s3, 2048, %s245_s27, [#allocation7], %s2168_s24, %s2168_s24, %s2169_s20  }
  0x41   : > { %s2200_s5 = sld [smem:[#allocation29_spill]] }
  0x47   : > { %s1384_s23 = scalar_lea.hbm %s2200_s5, 1024 }
  0x48   : > { %p1385_p1 = scmp.ne.s32.totalorder %s2200_s5, %s1384_s23  ;;  %p1391_p9 = scmp.lt.u32.totalorder %s1384_s23, %s2200_s5 }
  0x4a   : > { %p1387_p3 = pnand %p1385_p1, %p1358_p6 }
  0x4c   : > { %p1388_p5 = pneg %p1387_p3 }
  0x4e   : > { %p1393_p11 = pnand %p1391_p9, %p1388_p5 }
  0x50   : > { %1396 = shalt.err (!%p1393_p11)
}
  0x51   : > { %s1397_s27 = scalar_lea.vmem %s1801_s17, 1024  ;;  %p1405_p8 = scmp.lt.s32.totalorder %s1801_s17, %s1801_s17 }
  0x52   : > { %p1398_p13 = scmp.ne.s32.totalorder %s1801_s17, %s1397_s27  ;;  %p1406_p10 = scmp.lt.s32.totalorder %s1397_s27, %s1397_s27 }
  0x54   : > { %p1400_p4 = pnand %p1398_p13, %p1358_p6  ;;  %p1407_p12 = por %p1406_p10, %p1405_p8 }
  0x56   : > { %p1401_p7 = pneg %p1400_p4 }
  0x58   : > { %p1408_p0 = pnand %p1407_p12, %p1401_p7 }
  0x5a   : > { %1411 = shalt.err (!%p1408_p0)
}
  0x5b   : > { %1164 = dma.hbm_to_vmem [thread:$0]  (!%p1797_p2), %s2200_s5, 1024, %s1801_s17, [#allocation10], %s2168_s24, %s2168_s24, %s2169_s20  }
  0x5c   : > { %s36_s10 = sadd.s32 1, %s1622_s12  ;;  %s39_s30 = sadd.s32 1, %s1626_s13 }
  0x5d   : > { %p37_p6 = scmp.ge.s32.totalorder %s36_s10, 3  ;;  %s48_s6 = sadd.s32 1, %s1610_s9 }
  0x5e   : > { %p55_p1 = scmp.ne.s32.totalorder %s1610_s9, %s1606_s8  ;;  %p2178_p3 = scmp.eq.s32.totalorder %s1630_s14, 0 }
  0x5f   : > { %s2253_s10 = smov (%p37_p6, %s36_s10), 0  ;;  %s2255_s30 = smov (!%p37_p6, %s39_s30), %s1626_s13 }
  0x60   : > { %2201 = sst [smem:[#allocation25_spill]] %s2253_s10  ;;  %s1867_s7 = ssub.s32 %s1622_s12, %s2253_s10 }
  0x61   : > { %p1871_p2 = por %p2178_p3, %p55_p1  ;;  %p41_p5 = scmp.ge.s32.totalorder %s2255_s30, 2 }
  0x62   : > { %p72_p9 = scmp.eq.s32.totalorder %s1867_s7, 0  ;;  %p2177_p11 = scmp.lt.s32.totalorder %s1630_s14, 6 }
  0x63   : > { %s277_s11 = sand.u32 1, %s1610_s9   ;;  %s2257_s30 = smov (%p41_p5, %s2255_s30), 0 }
  0x64   : > { %s1025_s21 = sshll.u32 %s277_s11, 3  ;;  %s43_s23 = ssub.s32 %s1626_s13, %s2257_s30 }
  0x65   : > { %s45_s16 = sor.u32 %s1867_s7, %s43_s23  ;;  %p203_p13 = scmp.eq.s32.totalorder %s43_s23, 0 }
  0x66   : > { %p46_p4 = scmp.eq.s32.totalorder %s45_s16, 0  ;;  %s1143_s27 = smul.u32 6, %s1626_s13 }
  0x67   : > { %s2203_s2 = sadd.s32 1, %s1586_s26  ;;  %s281_s3 = scalar_lea.vmem [#allocation3], %s1025_s21 }
  0x68   : > { %s1887_s4 = scalar_select %p203_p13, %s1586_s26, %s2203_s2  }
  0x69   : > { %s1890_s24 = scalar_select %p46_p4, %s1610_s9, %s48_s6  }
  0x6a   : > { %s287_s20 = sadd.s32 %s1622_s12, %s1143_s27  ;;  %s290_s5 = sshll.u32 %s281_s3, 4  ;;  %s1893_s5 = int_to_ptr.vmem [resolvable:$true] %s290_s5 }
  0x6b   : > { %s1028_s10 = sshll.u32 %s287_s20, 6  ;;  %p1904_p7 = pnand %p2177_p11, %p1871_p2 }
  0x6c   : > { %s1898_s15 = scalar_lea.hbm %s2150_s0, %s1028_s10  ;;  %s1908_s3 = scalar_lea.sflag [#allocation4], %s277_s11 }
  0x6d   : > { %s1412_s20 = scalar_lea.hbm %s1898_s15, 128  ;;  %p1414_p10 = pneg %p1904_p7 }
  0x6e   : > { %p1413_p8 = scmp.ne.s32.totalorder %s1898_s15, %s1412_s20  ;;  %s1417_s10 = scalar_lea.hbm %s2150_s0, 768 }
  0x6f   : > { %p1418_p6 = scmp.lt.u32.totalorder %s1898_s15, %s2150_s0  ;;  %p1419_p1 = scmp.lt.u32.totalorder %s1417_s10, %s1412_s20 }
  0x70   : > { %p1415_p12 = pnand %p1414_p10, %p1413_p8  ;;  %p1421_p5 = scmp.lt.u32.totalorder %s1412_s20, %s1898_s15 }
  0x71   : > { %p1420_p2 = por %p1419_p1, %p1418_p6 }
  0x72   : > { %p1416_p0 = pneg %p1415_p12 }
  0x73   : > { %p1422_p13 = por %p1421_p5, %p1420_p2 }
  0x75   : > { %p1423_p4 = pnand %p1422_p13, %p1416_p0 }
  0x77   : > { %1426 = shalt.err (!%p1423_p4)
}
  0x78   : > { %s1427_s11 = scalar_lea.vmem %s1893_s5, 128  ;;  %s1636_s23 = smov [#allocation3]  }
  0x79   : > { %p1428_p8 = scmp.ne.s32.totalorder %s1893_s5, %s1427_s11  ;;  %s1432_s16 = sshll.u32 %s1636_s23, 4  ;;  %s1433_s16 = int_to_ptr.vmem [resolvable:$false] %s1432_s16 }
  0x7a   : > { %s1434_s27 = scalar_lea.vmem %s1433_s16, 256  ;;  %p1435_p3 = scmp.lt.s32.totalorder %s1893_s5, %s1433_s16 }
  0x7b   : > { %p1430_p12 = pnand %p1428_p8, %p1414_p10  ;;  %p1436_p6 = scmp.lt.s32.totalorder %s1434_s27, %s1427_s11 }
  0x7d   : > { %p1431_p11 = pneg %p1430_p12  ;;  %p1437_p1 = por %p1436_p6, %p1435_p3 }
  0x7f   : > { %p1438_p2 = pnand %p1437_p1, %p1431_p11 }
  0x81   : > { %1441 = shalt.err (!%p1438_p2)
}
  0x82   : > { %s1637_s2 = smov 192   ;;  %s2205_s20 = smov 4  }
  0x83   : > { %s2206_s25 = smov 64   ;;  %s74_s19 = sadd.s32 1, %s1598_s29 }
  0x84   : > { %1168 = dma.hbm_to_vmem [thread:$0]  (!%p1904_p7), %s1898_s15, 128, %s1893_s5, %s1908_s3, %s1637_s2, %s2206_s25, %s2205_s20  }
  0x85   : > { %p81_p3 = scmp.ne.s32.totalorder %s1598_s29, %s1594_s28  ;;  %p2207_p11 = scmp.eq.s32.totalorder %s1630_s14, 0 }
  0x86   : > { %s1944_s6 = scalar_select %p72_p9, %s1598_s29, %s74_s19  }
  0x87   : > { %p83_p10 = por %p81_p3, %p2207_p11  ;;  %s300_s10 = sand.u32 1, %s1630_s14  }
  0x88   : > { %s302_s17 = sand.u32 1, %s1598_s29   ;;  %s1090_s11 = sshll.u32 %s1622_s12, 11 }
  0x89   : > { %s1029_s21 = sshll.u32 %s302_s17, 7  ;;  %s1954_s27 = scalar_lea.hbm %s2151_s1, %s1090_s11 }
  0x8a   : > { %s304_s5 = scalar_lea.vmem [#allocation6], %s1029_s21  ;;  %p2208_p7 = scmp.lt.s32.totalorder %s1630_s14, 6 }
  0x8b   : > { %s312_s15 = sshll.u32 %s304_s5, 4  ;;  %s1964_s3 = scalar_lea.sflag [#allocation7], %s300_s10  ;;  %s1962_s15 = int_to_ptr.vmem [resolvable:$true] %s312_s15 }
  0x8c   : > { %p1958_p9 = pnand %p2208_p7, %p83_p10  ;;  %s1442_s2 = scalar_lea.hbm %s1954_s27, 2048 }
  0x8d   : > { %p1443_p0 = scmp.ne.s32.totalorder %s1954_s27, %s1442_s2  ;;  %s1447_s19 = scalar_lea.hbm %s2151_s1, 6144 }
  0x8e   : > { %p1444_p5 = pneg %p1958_p9  ;;  %p1448_p8 = scmp.lt.u32.totalorder %s1954_s27, %s2151_s1 }
  0x8f   : > { %p1449_p12 = scmp.lt.u32.totalorder %s1447_s19, %s1442_s2  ;;  %p1451_p1 = scmp.lt.u32.totalorder %s1442_s2, %s1954_s27 }
  0x90   : > { %p1445_p13 = pnand %p1444_p5, %p1443_p0 }
  0x91   : > { %p1450_p6 = por %p1449_p12, %p1448_p8 }
  0x92   : > { %p1446_p4 = pneg %p1445_p13 }
  0x93   : > { %p1452_p2 = por %p1451_p1, %p1450_p6 }
  0x95   : > { %p1453_p3 = pnand %p1452_p2, %p1446_p4 }
  0x97   : > { %1456 = shalt.err (!%p1453_p3)
}
  0x98   : > { %s1457_s10 = scalar_lea.vmem %s1962_s15, 2048  ;;  %s1638_s11 = smov [#allocation6]  }
  0x99   : > { %p1458_p11 = scmp.ne.s32.totalorder %s1962_s15, %s1457_s10  ;;  %s1462_s23 = sshll.u32 %s1638_s11, 4  ;;  %s1463_s23 = int_to_ptr.vmem [resolvable:$false] %s1462_s23 }
  0x9a   : > { %s1464_s16 = scalar_lea.vmem %s1463_s23, 4096  ;;  %p1465_p0 = scmp.lt.s32.totalorder %s1962_s15, %s1463_s23 }
  0x9b   : > { %p1460_p10 = pnand %p1458_p11, %p1444_p5  ;;  %p1466_p13 = scmp.lt.s32.totalorder %s1464_s16, %s1457_s10 }
  0x9d   : > { %p1461_p7 = pneg %p1460_p10  ;;  %p1467_p8 = por %p1466_p13, %p1465_p0 }
  0x9f   : > { %p1468_p12 = pnand %p1467_p8, %p1461_p7 }
  0xa1   : > { %1471 = shalt.err (!%p1468_p12)
}
  0xa2   : > { %s1639_s5 = smov 128   ;;  %s1640_s2 = smov 8  }
  0xa3   : > { %1171 = dma.hbm_to_vmem [thread:$0]  (!%p1958_p9), %s1954_s27, 2048, %s1962_s15, %s1964_s3, %s1639_s5, %s1639_s5, %s1640_s2  }
  0xa4   : > { %p2210_p5 = scmp.ne.s32.totalorder %s2197_s22, 0 }
  0xa5   : > { %s326_s20 = sand.u32 (!%p2210_p5), 1, %s1606_s8   ;;  %p2211_p4 = scmp.ne.s32.totalorder (!%p2210_p5), %s2190_s18, 0 }
  0xa6   : > { %324 = sbr.rel (%p2210_p5) target bundleno = 938 (0x3aa), region = 48  ;;  %s1995_s25 = sshll.u32 (!%p2210_p5), %s326_s20, 3 }
  0xa7   : > { %s327_s19 = scalar_lea.sflag (!%p2210_p5), [#allocation4], %s326_s20  ;;  %s330_s17 = scalar_lea.vmem (!%p2210_p5), [#allocation3], %s1995_s25 }
  0xad   : > { %1557 = dma.done.wait (%p2211_p4), %s327_s19, 128  }
  0xae   : > { %1559 = vsyncadd (%p2211_p4), %s327_s19, 4294967168  ;;  %s2212_s21 = sld [smem:[#allocation21_spill]]  ;;  %s2213_s7 = sld [smem:[#allocation22_spill]] }
  0xaf   : > { %s337_s15 = sand.u32 1, %s1594_s28  }
  0xb0   : > { %s1035_s22 = sshll.u32 %s337_s15, 7 }
  0xb1   : > { %s2004_s10 = scalar_lea.vmem [#allocation6], %s1035_s22 }
  0xb4   : > { %s335_s27 = sand.u32 1, %s2212_s21   ;;  %p2214_p9 = scmp.ne.s32.totalorder %s2213_s7, 0 }
  0xb5   : > { %s336_s3 = scalar_lea.sflag [#allocation7], %s335_s27 }
  0xb6   : > { %1561 = dma.done.wait (%p2214_p9), %s336_s3, 2048  }
  0xb7   : > { %1563 = vsyncadd (%p2214_p9), %s336_s3, 4294965248  ;;  %p2215_p6 = scmp.eq.s32.totalorder %s2212_s21, 0 }
  0xb9   : > { %1565 = dma.done.wait (%p2215_p6), [#allocation7], 2048   ;;  %p2216_p1 = pmov %p2215_p6 }
  0xbb   : > { %1567 = vsyncadd (%p2216_p1), [#allocation7], 4294965248  ;;  %p2217_p2 = pmov %p2216_p1 }
  0xbc   : > { %p2218_p3 = pmov %p2216_p1 }
  0xbd   : > { %1569 = dma.done.wait (%p2217_p2), [#allocation10], 1024  }
  0xbe   : > { %1571 = vsyncadd (%p2218_p3), [#allocation10], 4294966272  ;;  %s2219_s18 = sld [smem:[#allocation18_spill]]  ;;  %s2220_s5 = sld [smem:[#allocation19_spill]] }
  0xc4   : > { %s380_s11 = sand.u32 1, %s2219_s18   ;;  %p1039_p11 = scmp.ne.s32.totalorder %s2220_s5, 0 }
  0xc5   : > { %s1038_s23 = sshll.u32 %s380_s11, 4  ;;  %v1641_v0 = vmov (!%p1039_p11), 0.0  }
  0xc6   : > { %s2021_s16 = scalar_lea.vmem [#allocation11], %s1038_s23  ;;  %390 = sbr.rel (%p1039_p11) target bundleno = 205 (0xcd), region = 68  ;;  %391 = vst [vmem:[#allocation2] sm:$0xff] (!%p1039_p11), %v1641_v0  ;;  %392 = vst [vmem:[#allocation2 + $0x8] sm:$0xff] (!%p1039_p11), %v1641_v0 }
  0xc7   : > { %393 = vst [vmem:[#allocation2 + $0x10] sm:$0xff] (!%p1039_p11), %v1641_v0  ;;  %394 = vst [vmem:[#allocation2 + $0x18] sm:$0xff] (!%p1039_p11), %v1641_v0 }
  0xcd PF: > { %v1307_v1 = vld [vmem:[%s2004_s10 + $0x4] ss:$8 sps:$4 sm:$0xff]   ;;  %v1309_v2 = vld [vmem:[%s2004_s10] ss:$8 sps:$4 sm:$0xff]   ;;  %v1642_v3 = vmov 0   ;;  %v1331_v18 = vld [vmem:[%s330_s17] sm:$0xff]  }
  0xce   : > { %535 = vmatprep.mubr.bf16.mxu0 %v1642_v3  ;;  %503 = vmatprep.subr.bf16.mxu0 %v1307_v1  ;;  %v1310_v4 = vld [vmem:[%s2004_s10 + $0x14] ss:$8 sps:$4 sm:$0xff]   ;;  %v1312_v5 = vld [vmem:[%s2004_s10 + $0x10] ss:$8 sps:$4 sm:$0xff]   ;;  %v1313_v6 = vld [vmem:[%s2004_s10 + $0x24] ss:$8 sps:$4 sm:$0xff]  }
  0xcf   : > { %504 = vmatpush1.bf16.msra.mxu0 %v1309_v2  ;;  %v1315_v7 = vld [vmem:[%s2004_s10 + $0x20] ss:$8 sps:$4 sm:$0xff]   ;;  %v1316_v8 = vld [vmem:[%s2004_s10 + $0x34] ss:$8 sps:$4 sm:$0xff]   ;;  %v1318_v9 = vld [vmem:[%s2004_s10 + $0x30] ss:$8 sps:$4 sm:$0xff]  }
  0xd0   : > { %505 = vmatprep.subr.bf16.mxu0 %v1310_v4  ;;  %v1319_v10 = vld [vmem:[%s2004_s10 + $0x44] ss:$8 sps:$4 sm:$0xff]   ;;  %v1321_v11 = vld [vmem:[%s2004_s10 + $0x40] ss:$8 sps:$4 sm:$0xff]   ;;  %v1322_v12 = vld [vmem:[%s2004_s10 + $0x54] ss:$8 sps:$4 sm:$0xff]  }
  0xd1   : > { %v1324_v13 = vld [vmem:[%s2004_s10 + $0x50] ss:$8 sps:$4 sm:$0xff]   ;;  %v1325_v14 = vld [vmem:[%s2004_s10 + $0x64] ss:$8 sps:$4 sm:$0xff]   ;;  %v1327_v15 = vld [vmem:[%s2004_s10 + $0x60] ss:$8 sps:$4 sm:$0xff]  }
  0xd2   : > { %v1328_v16 = vld [vmem:[%s2004_s10 + $0x74] ss:$8 sps:$4 sm:$0xff]   ;;  %v1330_v17 = vld [vmem:[%s2004_s10 + $0x70] ss:$8 sps:$4 sm:$0xff]   ;;  %v397_v22 = vld [vmem:[#allocation2 + $0x10] sm:$0xff]  ;;  %s2221_s2 = sld [smem:[#allocation19_spill]] }
  0xd3   : > { %506 = vmatpush1.bf16.msra.mxu0 %v1312_v5  ;;  %v395_v19 = vld [vmem:[#allocation2] sm:$0xff]  ;;  %v396_v20 = vld [vmem:[#allocation2 + $0x8] sm:$0xff]  ;;  %v398_v25 = vld [vmem:[#allocation2 + $0x18] sm:$0xff] }
  0xd4   : > { %507 = vmatprep.subr.bf16.mxu0 %v1313_v6 }
  0xd7   : > { %508 = vmatpush1.bf16.msra.mxu0 %v1315_v7 }
  0xd8   : > { %509 = vmatprep.subr.bf16.mxu0 %v1316_v8  ;;  %p1057_p10 = scmp.ne.s32.totalorder %s2221_s2, 2 }
  0xd9   : > { %v1332_v31 = vld [vmem:[#allocation8 + $0x40] sm:$0xff] (!%p1057_p10)   ;;  %v1643_v33 = vmov (!%p1057_p10), 0.0   ;;  %v1334_v34 = vld [vmem:[#allocation8 + $0x48] sm:$0xff] (!%p1057_p10)   ;;  %v1336_v36 = vld [vmem:[#allocation8 + $0x50] sm:$0xff] (!%p1057_p10)   ;;  %v564_v37 = vlaneseq (!%p1057_p10)  ;;  %s2222_s19 = sld [smem:[#allocation26_spill]] (!%p1057_p10)  ;;  %vm1644_vm0 = vmmov (!%p1057_p10), 0  }
  0xda   : > { %v1333_v32 = vld [vmem:[#allocation8] sm:$0xff] (!%p1057_p10)   ;;  %1123 = vmatprep.subr.bf16.mxu1 (!%p1057_p10), %v1643_v33  ;;  %v1335_v35 = vld [vmem:[#allocation8 + $0x8] sm:$0xff] (!%p1057_p10)   ;;  %v1337_v38 = vld [vmem:[#allocation8 + $0x10] sm:$0xff] (!%p1057_p10)   ;;  %1139 = vmatprep.mubr.msk.bf16.mxu1 (!%p1057_p10), %vm1644_vm0, %v1643_v33  ;;  %s2223_s7 = sld [smem:[#allocation28_spill]] (!%p1057_p10)  ;;  %s2224_s22 = sld [smem:[#allocation30_spill]] (!%p1057_p10) }
  0xdb   : > { %510 = vmatpush1.bf16.msra.mxu0 %v1318_v9  ;;  %v1338_v39 = vld [vmem:[#allocation8 + $0x58] sm:$0xff] (!%p1057_p10)   ;;  %v565_v40 = vshrl.u32 (!%p1057_p10), %v564_v37, 7  ;;  %v1340_v42 = vld [vmem:[#allocation8 + $0x60] sm:$0xff] (!%p1057_p10)   ;;  %v1342_v46 = vld [vmem:[#allocation8 + $0x68] sm:$0xff] (!%p1057_p10)  }
  0xdc   : > { %511 = vmatprep.subr.bf16.mxu0 %v1319_v10  ;;  %v1339_v41 = vld [vmem:[#allocation8 + $0x18] sm:$0xff] (!%p1057_p10)   ;;  %v1341_v44 = vld [vmem:[#allocation8 + $0x20] sm:$0xff] (!%p1057_p10)   ;;  %v1343_v50 = vld [vmem:[#allocation8 + $0x28] sm:$0xff] (!%p1057_p10)  }
  0xdd   : > { %v570_v43 = vsub.s32 (!%p1057_p10), 1, %v565_v40  ;;  %v566_v45 = vsub.s32 (!%p1057_p10), 0, %v565_v40  ;;  %v1344_v53 = vld [vmem:[#allocation8 + $0x70] sm:$0xff] (!%p1057_p10)   ;;  %v1348_v55 = vld [vmem:[#allocation9] sm:$0xff] (!%p1057_p10)   ;;  %v1349_v59 = vld [vmem:[#allocation9 + $0x8] sm:$0xff] (!%p1057_p10)  }
  0xde   : > { %1124 = vmatpush3.bf16.msra.mxu1 (!%p1057_p10), %v1348_v55  ;;  %v1345_v60 = vld [vmem:[#allocation8 + $0x30] sm:$0xff] (!%p1057_p10)   ;;  %v1346_v63 = vld [vmem:[#allocation8 + $0x78] sm:$0xff] (!%p1057_p10)   ;;  %v1352_v9 = vld [vmem:[#allocation9 + $0x20] sm:$0xff] (!%p1057_p10)  }
  0xdf   : > { %512 = vmatpush1.bf16.msra.mxu0 %v1321_v11  ;;  %v562_v49 = vld [vmem:[%s2222_s19] sm:$0x3] (!%p1057_p10)  ;;  %1125 = vmatprep.subr.bf16.mxu1 (!%p1057_p10), %v1643_v33  ;;  %v1347_v6 = vld [vmem:[#allocation8 + $0x38] sm:$0xff] (!%p1057_p10)   ;;  %v1353_v10 = vld [vmem:[#allocation9 + $0x28] sm:$0xff] (!%p1057_p10)  }
  0xe0   : > { %513 = vmatprep.subr.bf16.mxu0 %v1322_v12  ;;  %v571_v51 = vrot.slane (!%p1057_p10), %v562_v49, %v570_v43  ;;  %v567_v54 = vrot.slane (!%p1057_p10), %v562_v49, %v566_v45  ;;  %v1350_v3 = vld [vmem:[#allocation9 + $0x10] sm:$0xff] (!%p1057_p10)   ;;  %v1351_v7 = vld [vmem:[#allocation9 + $0x18] sm:$0xff] (!%p1057_p10)  }
  0xe1   : > { %v1354_v11 = vld [vmem:[#allocation9 + $0x30] sm:$0xff] (!%p1057_p10)   ;;  %v1355_v12 = vld [vmem:[#allocation9 + $0x38] sm:$0xff] (!%p1057_p10)  }
  0xe2   : > { %1126 = vmatpush3.bf16.msra.mxu1 (!%p1057_p10), %v1349_v59 }
  0xe3   : > { %514 = vmatpush1.bf16.msra.mxu0 %v1324_v13  ;;  %1127 = vmatprep.subr.bf16.mxu1 (!%p1057_p10), %v1643_v33 }
  0xe4   : > { %515 = vmatprep.subr.bf16.mxu0 %v1325_v14  ;;  %v1058_v14 = vld [vmem:[%s2223_s7] ss:$0 sm:$0xff] (!%p1057_p10) }
  0xe6   : > { %1128 = vmatpush3.bf16.msra.mxu1 (!%p1057_p10), %v1350_v3 }
  0xe7   : > { %516 = vmatpush1.bf16.msra.mxu0 %v1327_v15  ;;  %1129 = vmatprep.subr.bf16.mxu1 (!%p1057_p10), %v1643_v33 }
  0xe8   : > { %517 = vmatprep.subr.bf16.mxu0 %v1328_v16 }
  0xea   : > { %1130 = vmatpush3.bf16.msra.mxu1 (!%p1057_p10), %v1351_v7 }
  0xeb   : > { %518 = vmatpush1.bf16.msra.mxu0 %v1330_v17  ;;  %1131 = vmatprep.subr.bf16.mxu1 (!%p1057_p10), %v1643_v33 }
  0xec   : > { %1092 = vmatprep.subr.bf16.mxu0 (!%p1057_p10), %v1332_v31 }
  0xee   : > { %536 = vmatmul.mubr.bf16.vlgmr.msra.gmra.mrb[0].mxu0 %v1331_v18  ;;  %1132 = vmatpush3.bf16.msra.mxu1 (!%p1057_p10), %v1352_v9 }
  0xef   : > { %1093 = vmatpush3.bf16.msra.mxu0 (!%p1057_p10), %v1333_v32  ;;  %1133 = vmatprep.subr.bf16.mxu1 (!%p1057_p10), %v1643_v33 }
  0xf0   : > { %1094 = vmatprep.subr.bf16.mxu0 (!%p1057_p10), %v1334_v34 }
  0xf2   : > { %1134 = vmatpush3.bf16.msra.mxu1 (!%p1057_p10), %v1353_v10 }
  0xf3   : > { %1095 = vmatpush3.bf16.msra.mxu0 (!%p1057_p10), %v1335_v35  ;;  %1135 = vmatprep.subr.bf16.mxu1 (!%p1057_p10), %v1643_v33 }
  0xf4   : > { %1096 = vmatprep.subr.bf16.mxu0 (!%p1057_p10), %v1336_v36 }
  0xf6   : > { %1136 = vmatpush3.bf16.msra.mxu1 (!%p1057_p10), %v1354_v11 }
  0xf7   : > { %1097 = vmatpush3.bf16.msra.mxu0 (!%p1057_p10), %v1337_v38  ;;  %1137 = vmatprep.subr.bf16.mxu1 (!%p1057_p10), %v1643_v33 }
  0xf8   : > { %1098 = vmatprep.subr.bf16.mxu0 (!%p1057_p10), %v1338_v39 }
  0xfa   : > { %1138 = vmatpush3.bf16.msra.mxu1 (!%p1057_p10), %v1355_v12 }
  0xfb   : > { %1099 = vmatpush3.bf16.msra.mxu0 (!%p1057_p10), %v1339_v41 }
  0xfc   : > { %1100 = vmatprep.subr.bf16.mxu0 (!%p1057_p10), %v1340_v42 }
  0xff   : > { %1101 = vmatpush3.bf16.msra.mxu0 (!%p1057_p10), %v1341_v44 }
 0x100   : > { %1102 = vmatprep.subr.bf16.mxu0 (!%p1057_p10), %v1342_v46 }
 0x103   : > { %1103 = vmatpush3.bf16.msra.mxu0 (!%p1057_p10), %v1343_v50 }
 0x104   : > { %1104 = vmatprep.subr.bf16.mxu0 (!%p1057_p10), %v1344_v53 }
 0x107   : > { %1105 = vmatpush3.bf16.msra.mxu0 (!%p1057_p10), %v1345_v60 }
 0x108   : > { %1106 = vmatprep.subr.bf16.mxu0 (!%p1057_p10), %v1346_v63 }
 0x10b   : > { %1107 = vmatpush3.bf16.msra.mxu0 (!%p1057_p10), %v1347_v6 }
 0x1c1   : > { %v537_v21 = vpop.f32.mrb[0].mxu0  ;;  %557 = sbr.rel (%p1057_p10) target bundleno = 910 (0x38e), region = 72 }
 0x1c2   : > { %v546_v23 = vadd.f32 %v537_v21, %v395_v19  ;;  %v539_v24 = vpop.f32.mrb[1].mxu0 }
 0x1c3   : > { %v547_v26 = vadd.f32 %v539_v24, %v396_v20  ;;  %v541_v27 = vpop.f32.mrb[2].mxu0 }
 0x1c4   : > { %550 = vst [vmem:[#allocation2] sm:$0xff] %v546_v23  ;;  %v548_v28 = vadd.f32 %v541_v27, %v397_v22  ;;  %v543_v29 = vpop.f32.mrb[3].mxu0 }
 0x1c5   : > { %551 = vst [vmem:[#allocation2 + $0x8] sm:$0xff] %v547_v26  ;;  %v549_v30 = vadd.f32 %v543_v29, %v398_v25  ;;  %v1075_v25 = vld [vmem:[%s2224_s22] ss:$0 sm:$0xff] (!%p1057_p10) }
 0x1c6   : > { %552 = vst [vmem:[#allocation2 + $0x10] sm:$0xff] %v548_v28 }
 0x1c7   : > { %553 = vst [vmem:[#allocation2 + $0x18] sm:$0xff] %v549_v30 }
 0x1cb   : > { %v558_v52 = vld [vmem:[#allocation2] sm:$0xff] }
 0x1cc   : > { %v559_v47 = vld [vmem:[#allocation2 + $0x8] sm:$0xff]  ;;  %v574_v0 = vadd.f32 %v567_v54, %v558_v52 }
 0x1cd   : > { %v575_v56 = vadd.f32 %v571_v51, %v559_v47  ;;  %v560_v58 = vld [vmem:[#allocation2 + $0x10] sm:$0xff] }
 0x1ce   : > { %v561_v48 = vld [vmem:[#allocation2 + $0x18] sm:$0xff]  ;;  %v576_v1 = vadd.f32 %v567_v54, %v560_v58  ;;  %v578_v4 = vmax.f32 %v574_v0, 0.0 }
 0x1cf   : > { %v577_v57 = vadd.f32 %v571_v51, %v561_v48  ;;  %v579_v61 = vmax.f32 %v575_v56, 0.0 }
 0x1d0   : > { %v580_v5 = vmax.f32 %v576_v1, 0.0 }
 0x1d1   : > { %v581_v62 = vmax.f32 %v577_v57, 0.0 }
 0x1d2   : > { %v582_v8 = vpack.c.bf16 %v580_v5, %v578_v4 }
 0x1d3   : > { %v583_v2 = vpack.c.bf16 %v581_v62, %v579_v61 }
 0x1d5   : > { %751 = vmatprep.mubr.bf16.mxu0 %v583_v2 }
 0x1d6   : > { %752 = vmatmul.mubr.bf16.vlgmr.msra.gmra.mrb[0].mxu0 %v582_v8 }
 0x2a9   : > { %v1108_v13 = vpop.f32.mrb[0].mxu0 }
 0x2aa   : > { %v1109_v15 = vpop.f32.mrb[1].mxu0 }
 0x2ab   : > { %v1110_v16 = vadd.f32 %v1109_v15, %v1108_v13  ;;  %v1111_v17 = vpop.f32.mrb[2].mxu0 }
 0x2ac   : > { %v1112_v18 = vpop.f32.mrb[3].mxu0 }
 0x2ad   : > { %v754_v19 = vadd.f32 %v1110_v16, %v1058_v14  ;;  %v1113_v20 = vadd.f32 %v1112_v18, %v1111_v17 }
 0x2af   : > { %v757_v21 = vadd.f32 %v1113_v20, %v1058_v14  ;;  %v760_v22 = vmax.f32 %v754_v19, 0.0 }
 0x2b1   : > { %v761_v23 = vmax.f32 %v757_v21, 0.0 }
 0x2b3   : > { %v762_v24 = vpack.c.bf16 %v761_v23, %v760_v22 }
 0x2b5   : > { %1140 = vmatmul.mubr.bf16.vlgmr.msra.gmra.mrb[0].mxu1 %v762_v24 }
 0x388   : > { %v868_v26 = vpop.f32.mrb[0].mxu1 }
 0x389   : > { %v869_v27 = vadd.f32 %v1075_v25, %v868_v26  ;;  %v1141_v28 = vpop.f32.mrb[1].mxu1 }
 0x38a   : > { %v871_v29 = vpop.f32.mrb[2].mxu1 }
 0x38b   : > { %875 = vst [vmem:[%s2021_s16] sm:$0xff] %v869_v27  ;;  %v872_v30 = vadd.f32 %v1075_v25, %v871_v29  ;;  %v1142_v31 = vpop.f32.mrb[3].mxu1 }
 0x38d   : > { %876 = vst [vmem:[%s2021_s16 + $0x8] sm:$0xff] %v872_v30 }
 0x38e PF: > { %s2225_s3 = sld [smem:[#allocation20_spill]]  ;;  %s2227_s18 = sld [smem:[#allocation23_spill]] }
 0x38f   : > { %s2228_s20 = sld [smem:[#allocation31_spill]]  ;;  %s891_s19 = sshll.u32 %s2021_s16, 4  ;;  %s2070_s19 = int_to_ptr.vmem [resolvable:$true] %s891_s19 }
 0x390   : > { %s2074_s17 = scalar_lea.sflag [#allocation5], %s380_s11  ;;  %s1472_s21 = scalar_lea.vmem %s2070_s19, 256 }
 0x391   : > { %p1473_p7 = scmp.ne.s32.totalorder %s2070_s19, %s1472_s21  ;;  %s1645_s7 = smov [#allocation11]  }
 0x392   : > { %s1476_s27 = sshll.u32 %s1645_s7, 4  ;;  %s1477_s27 = int_to_ptr.vmem [resolvable:$false] %s1476_s27 }
 0x393   : > { %s1478_s15 = scalar_lea.vmem %s1477_s27, 512  ;;  %p1479_p12 = scmp.lt.s32.totalorder %s2070_s19, %s1477_s27 }
 0x394   : > { %s1091_s23 = sshll.u32 %s2225_s3, 8  ;;  %p2229_p0 = scmp.ne.s32.totalorder %s2227_s18, 0 }
 0x395   : > { %s2067_s25 = scalar_lea.hbm %s2228_s20, %s1091_s23  ;;  %p1480_p5 = scmp.lt.s32.totalorder %s1478_s15, %s1472_s21 }
 0x396   : > { %p1474_p13 = pnand %p1473_p7, %p2229_p0 }
 0x397   : > { %p1481_p4 = por %p1480_p5, %p1479_p12 }
 0x398   : > { %p1475_p8 = pneg %p1474_p13 }
 0x39a   : > { %p1482_p9 = pnand %p1481_p4, %p1475_p8 }
 0x39c   : > { %1485 = shalt.err (!%p1482_p9)
}
 0x39d   : > { %s1486_s11 = scalar_lea.hbm %s2067_s25, 256  ;;  %s1490_s3 = scalar_lea.hbm %s2228_s20, 512 }
 0x39e   : > { %p1487_p6 = scmp.ne.s32.totalorder %s2067_s25, %s1486_s11  ;;  %p1491_p3 = scmp.lt.u32.totalorder %s2067_s25, %s2228_s20 }
 0x39f   : > { %p1492_p11 = scmp.lt.u32.totalorder %s1490_s3, %s1486_s11  ;;  %p1494_p7 = scmp.lt.u32.totalorder %s1486_s11, %s2067_s25 }
 0x3a0   : > { %p1488_p1 = pnand %p1487_p6, %p2229_p0 }
 0x3a1   : > { %p1493_p10 = por %p1492_p11, %p1491_p3 }
 0x3a2   : > { %p1489_p2 = pneg %p1488_p1 }
 0x3a3   : > { %p1495_p13 = por %p1494_p7, %p1493_p10 }
 0x3a5   : > { %p1496_p8 = pnand %p1495_p13, %p1489_p2 }
 0x3a7   : > { %1499 = shalt.err (!%p1496_p8)
}
 0x3a8   : > { %s1646_s5 = smov 128   ;;  %s1647_s2 = smov 8  }
 0x3a9   : > { %1156 = dma.vmem_to_hbm [thread:$0]  (%p2229_p0), %s2070_s19, 256, %s2067_s25, %s2074_s17, %s1646_s5, %s1646_s5, %s1647_s2  }
 0x3aa PF: > { %s2230_s21 = sld [smem:[#allocation17_spill]]  ;;  %s2231_s7 = sld [smem:[#allocation24_spill]] }
 0x3ab   : > { %p1181_p12 = scmp.ge.s32.totalorder %s1630_s14, 2 }
 0x3b0   : > { %s906_s27 = sand.u32 1, %s2230_s21   ;;  %p2232_p5 = scmp.ne.s32.totalorder %s2231_s7, 0 }
 0x3b1   : > { %s907_s15 = scalar_lea.sflag [#allocation5], %s906_s27 }
 0x3b2   : > { %p1173_p4 = pnand %p1181_p12, %p2232_p5 }
 0x3b4   : > { %1573 = dma.done.wait (!%p1173_p4), %s907_s15, 256  }
 0x3b5   : > { %1575 = vsyncadd (!%p1173_p4), %s907_s15, 4294967040  ;;  %s27_s14 = sadd.s32 1, %s1630_s14   ;;  %s2234_s16 = sld [smem:[#allocation18_spill]] }
 0x3b6   : > { %p2103_p9 = scmp.ge.s32.totalorder %s27_s14, 8   ;;  %s2235_s18 = smov %s1890_s24 }
 0x3b7   : > { %s2236_s19 = sld [smem:[#allocation25_spill]]  ;;  %s2237_s17 = smov %s2257_s30 }
 0x3b8   : > { %s2240_s25 = smov %s1586_s26  ;;  %s2241_s26 = smov %s1887_s4 }
 0x3b9   : > { %s2242_s27 = smov %s1594_s28  ;;  %s2243_s28 = smov %s1598_s29 }
 0x3ba   : > { %s2244_s29 = smov %s1944_s6  ;;  %s2245_s30 = smov %s1606_s8 }
 0x3bb   : > { %s2239_s24 = smov %s2234_s16  ;;  %s2246_s8 = smov %s1610_s9 }
 0x3bc   : > { %s2247_s9 = smov %s2235_s18  ;;  %s2248_s10 = smov %s1622_s12 }
 0x3bd   : > { %s2249_s11 = smov %s1626_s13  ;;  %s2250_s12 = smov %s2236_s19 }
 0x3be   : > { %s2251_s13 = smov %s2237_s17  ;;  %26 = sbr.rel (!%p2103_p9) target bundleno = 20 (0x14), region = 122 }
 0x3c5   :  { %912 = vsyncpa [#allocation4], 1 }
 0x3c6   :  { %914 = vsyncpa [#allocation4 + $0x1], 1 }
 0x3c7   :  { %915 = vsyncpa [#allocation7], 1 }
 0x3c8   :  { %917 = vsyncpa [#allocation7 + $0x1], 1 }
 0x3c9   :  { %918 = vsyncpa [#allocation10], 1 }
 0x3ca   :  { %919 = vsyncpa [#allocation5], 1 }
 0x3cb   :  { %921 = vsyncpa [#allocation5 + $0x1], 1 }

</bundles_post_ra>
